<compile_context>
chip_gen: v7x
topology: tpu7x:2x2x1
jax: 0.10.0
libtpu: 0.0.40
codegen_flags: <defaults>
</compile_context>

<pallas_src>
import functools

import jax
import jax.numpy as jnp
from jax import lax
from jax.experimental import pallas as pl
from jax.experimental.pallas import tpu as pltpu

_EPS = 1e-8                    # matches nn.GroupNorm(1, N, eps=1e-8) from select_norm('ln', N, 4)
_ROW_TILE_CAP = 1024           # review: 512-1024 row tiles reach ~85-86% of the HBM roofline
_VMEM_LIMIT_BYTES = 32 * 1024 * 1024   # explicit scoped-VMEM budget (>= v5e 16 MiB default,
                                       # <= v7x 64 MiB physical); raise toward ~48 MiB for big N
_VMEM_ROW_BUDGET = 40 * 1024 * 1024    # activation budget used to derive the row tile (v7x-safe)


def _row_tile(rows, n_feat):
    """Largest legal row tile under the VMEM budget (kernel B is the heaviest call)."""
    # Kernel B per-row VMEM bytes: xc f32 (4N) + y1/intra/y2 bf16 (3*2N) = 10N,
    # x2 for double buffering = 20N, plus ~4N for the in-kernel f32 `h` temporary -> ~24N.
    cap = _VMEM_ROW_BUDGET // (24 * n_feat)
    cap = max(16, min(_ROW_TILE_CAP, (cap // 16) * 16))   # multiple of 16 (bf16 sublane packing)
    return rows if rows <= cap else cap


def _tile_stats(y, t, rows, masked):
    """(sum, sum-of-squares) of the valid rows of this f32 tile, as a (2, 128) slab.
    `masked` is static: the iota/select path is only built when K*S % blk != 0."""
    if masked:
        # Tail tile: rows beyond `rows` hold garbage read past the array end; a *select* mask
        # (not a multiply) keeps NaN/Inf garbage out of the stats.  The garbage output rows are
        # dropped by Pallas' bounded writeback.
        rid = t * y.shape[0] + lax.broadcasted_iota(jnp.int32, (y.shape[0], 1), 0)
        y = jnp.where(rid < rows, y, 0.0)
    s1 = jnp.sum(y)
    s2 = jnp.sum(y * y)
    which = lax.broadcasted_iota(jnp.int32, (2, 128), 0)
    return jnp.where(which == 0, s1, s2)


def _accumulate_stats(st_ref, st, t):
    """Output-resident accumulator across the (arbitrary) t axis."""
    @pl.when(t == 0)
    def _():
        st_ref[0] = st

    @pl.when(t > 0)
    def _():
        st_ref[0] = st_ref[0] + st


# ------------------ kernel A: intra_mdl (Linear+ReLU) -> intra_linear, + GN stats --------------
def _intra_kernel(x_ref, wm_ref, bm_ref, wl_ref, bl_ref, y_ref, st_ref, *, rows, masked):
    t = pl.program_id(1)
    # TODO(synk): intra_mdl/inter_mdl are external nn.Modules (SBTransformerBlock in the
    # reference); modeled here as a per-position Linear(N,N)+ReLU (attention not replicated).
    x = x_ref[0]                                                        # [blk, N] f32
    h = jnp.dot(x.astype(jnp.bfloat16), wm_ref[...],
                preferred_element_type=jnp.float32) + bm_ref[...]
    h = jnp.maximum(h, 0.0)
    y = jnp.dot(h.astype(jnp.bfloat16), wl_ref[...],
                preferred_element_type=jnp.float32) + bl_ref[...]
    y_ref[0] = y.astype(y_ref.dtype)                                    # bf16 slab store
    _accumulate_stats(st_ref, _tile_stats(y, t, rows, masked), t)       # stats from pre-cast f32


# ------ kernel B: intra-GN apply + skip(x), fused with inter_mdl -> inter_linear, + stats ------
def _inter_kernel(y1_ref, x_ref, mr_ref, gw_ref, gb_ref,
                  wm_ref, bm_ref, wl_ref, bl_ref,
                  intra_ref, y2_ref, st_ref, *, rows, masked):
    b = pl.program_id(0)
    t = pl.program_id(1)
    mean = mr_ref[b, 0]
    rstd = mr_ref[b, 1]
    y1 = y1_ref[0].astype(jnp.float32)                                  # bf16 slab -> f32
    intra = (y1 - mean) * rstd * gw_ref[...] + gb_ref[...] + x_ref[0]   # GN apply + skip(x), f32
    intra_bf = intra.astype(jnp.bfloat16)
    intra_ref[0] = intra_bf                                             # bf16 slab store
    h = jnp.dot(intra_bf, wm_ref[...],
                preferred_element_type=jnp.float32) + bm_ref[...]
    h = jnp.maximum(h, 0.0)
    y2 = jnp.dot(h.astype(jnp.bfloat16), wl_ref[...],
                 preferred_element_type=jnp.float32) + bl_ref[...]
    y2_ref[0] = y2.astype(y2_ref.dtype)
    _accumulate_stats(st_ref, _tile_stats(y2, t, rows, masked), t)


# ------------------ kernel C: inter-GN apply + skip(intra) -> output ---------------------------
def _finish_kernel(y2_ref, intra_ref, mr_ref, gw_ref, gb_ref, o_ref):
    b = pl.program_id(0)
    mean = mr_ref[b, 0]
    rstd = mr_ref[b, 1]
    y2 = y2_ref[0].astype(jnp.float32)
    o_ref[0] = ((y2 - mean) * rstd * gw_ref[...] + gb_ref[...]
                + intra_ref[0].astype(jnp.float32)).astype(o_ref.dtype)


# ------------------ wrapper --------------------------------------------------------------------
def _mean_rstd(st, count):
    """st: [B, 2, 128] f32 (row 0 = sum, row 1 = sumsq, broadcast on lanes) -> [B, 2] (mean, rstd)."""
    s = st[:, :, 0]                                                     # [B, 2]
    mean = s[:, 0] / count
    var = jnp.maximum(s[:, 1] / count - mean * mean, 0.0)               # single-pass, f32 accum
    return jnp.stack([mean, lax.rsqrt(var + _EPS)], axis=1)             # [B, 2]


def dual_computation_block_slab(xc, p):
    """Channels-last forward: xc [B, K*S, N] f32 -> [B, K*S, N] f32.
    Use this form when stacking Dual_Computation_Blocks (Dual_Path_Model) so the layout
    transposes are paid once at the model boundary rather than per block."""
    B, KS, N = xc.shape
    blk = _row_tile(KS, N)
    T = pl.cdiv(KS, blk)
    masked = (KS % blk) != 0

    cp_acc = pltpu.CompilerParams(dimension_semantics=("parallel", "arbitrary"),
                                  vmem_limit_bytes=_VMEM_LIMIT_BYTES)
    cp_par = pltpu.CompilerParams(dimension_semantics=("parallel", "parallel"),
                                  vmem_limit_bytes=_VMEM_LIMIT_BYTES)

    row_spec = pl.BlockSpec((1, blk, N), lambda b, t: (b, t, 0))
    w_spec = pl.BlockSpec((N, N), lambda b, t: (0, 0))          # VMEM-resident weights
    v_spec = pl.BlockSpec((1, N), lambda b, t: (0, 0))
    st_spec = pl.BlockSpec((1, 2, 128), lambda b, t: (b, 0, 0))  # resident accumulator across t
    smem_spec = pl.BlockSpec(memory_space=pltpu.MemorySpace.SMEM)

    slab_bf16 = jax.ShapeDtypeStruct((B, KS, N), jnp.bfloat16)
    slab_f32 = jax.ShapeDtypeStruct((B, KS, N), jnp.float32)
    st_shape = jax.ShapeDtypeStruct((B, 2, 128), jnp.float32)

    bf = jnp.bfloat16
    wm1, wl1 = p["intra_mdl_w"].astype(bf), p["intra_lin_w"].astype(bf)
    wm2, wl2 = p["inter_mdl_w"].astype(bf), p["inter_lin_w"].astype(bf)

    # --- intra path: fused dense+ReLU+dense; intermediate h never leaves VMEM
    y1, st1 = pl.pallas_call(
        functools.partial(_intra_kernel, rows=KS, masked=masked),
        out_shape=(slab_bf16, st_shape),
        grid=(B, T),
        in_specs=[row_spec, w_spec, v_spec, w_spec, v_spec],
        out_specs=(row_spec, st_spec),
        compiler_params=cp_acc,
    )(xc, wm1, p["intra_mdl_b"].reshape(1, N), wl1, p["intra_lin_b"].reshape(1, N))
    mr1 = _mean_rstd(st1, KS * N)

    # --- inter path: intra-GN apply + residual fused with the inter dense pair
    intra, y2, st2 = pl.pallas_call(
        functools.partial(_inter_kernel, rows=KS, masked=masked),
        out_shape=(slab_bf16, slab_bf16, st_shape),
        grid=(B, T),
        in_specs=[row_spec, row_spec, smem_spec, v_spec, v_spec,
                  w_spec, v_spec, w_spec, v_spec],
        out_specs=(row_spec, row_spec, st_spec),
        compiler_params=cp_acc,
    )(y1, xc, mr1,
      p["intra_norm_w"].reshape(1, N), p["intra_norm_b"].reshape(1, N),
      wm2, p["inter_mdl_b"].reshape(1, N), wl2, p["inter_lin_b"].reshape(1, N))
    mr2 = _mean_rstd(st2, KS * N)

    # --- inter-GN apply + residual(intra)
    out_c = pl.pallas_call(
        _finish_kernel,
        out_shape=slab_f32,
        grid=(B, T),
        in_specs=[row_spec, row_spec, smem_spec, v_spec, v_spec],
        out_specs=row_spec,
        compiler_params=cp_par,
    )(y2, intra, mr2,
      p["inter_norm_w"].reshape(1, N), p["inter_norm_b"].reshape(1, N))
    return out_c


def dual_computation_block(x, p):
    """Module-facing forward of Dual_Computation_Block (norm='ln', skip_around_intra=True,
    linear_layer_after_inter_intra=True).  x: [B, N, K, S] -> [B, N, K, S]."""
    B, N, K, S = x.shape
    xc = jnp.transpose(x, (0, 2, 3, 1)).reshape(B, K * S, N)     # single entry transpose
    out_c = dual_computation_block_slab(xc, p)
    return jnp.transpose(out_c.reshape(B, K, S, N), (0, 3, 1, 2))  # single exit transpose


# ------------------ pure-jnp reference mirroring the kernel's precision policy ------------------
def _reference(x, p):
    """Same math + same mixed-precision policy (bf16 matmul inputs / bf16 intermediate slabs,
    f32 accumulation and f32 GroupNorm statistics from the pre-cast values)."""
    B, N, K, S = x.shape
    f32, bf = jnp.float32, jnp.bfloat16
    xc = jnp.transpose(x, (0, 2, 3, 1)).reshape(B, K * S, N).astype(f32)
    wm1, wl1 = p["intra_mdl_w"].astype(bf), p["intra_lin_w"].astype(bf)
    wm2, wl2 = p["inter_mdl_w"].astype(bf), p["inter_lin_w"].astype(bf)

    def mm(a_bf, w_bf):
        return jnp.einsum("brn,nm->brm", a_bf, w_bf, preferred_element_type=f32)

    def stats(v):
        m = jnp.mean(v, axis=(1, 2), keepdims=True)
        var = jnp.mean(jnp.square(v - m), axis=(1, 2), keepdims=True)
        return m, lax.rsqrt(var + _EPS)

    h1 = jax.nn.relu(mm(xc.astype(bf), wm1) + p["intra_mdl_b"])
    y1 = mm(h1.astype(bf), wl1) + p["intra_lin_b"]
    m1, r1 = stats(y1)                       # stats from pre-cast f32, as in the kernel
    y1 = y1.astype(bf).astype(f32)           # bf16 slab round-trip
    intra = (y1 - m1) * r1 * p["intra_norm_w"] + p["intra_norm_b"] + xc
    intra_b = intra.astype(bf)               # bf16 slab round-trip
    h2 = jax.nn.relu(mm(intra_b, wm2) + p["inter_mdl_b"])
    y2 = mm(h2.astype(bf), wl2) + p["inter_lin_b"]
    m2, r2 = stats(y2)
    y2 = y2.astype(bf).astype(f32)
    out = (y2 - m2) * r2 * p["inter_norm_w"] + p["inter_norm_b"] + intra_b.astype(f32)
    return jnp.transpose(out.reshape(B, K, S, N), (0, 3, 1, 2))


# ------------------ deterministic parameter init -------------------------------------------------
def init_params(key, N):
    ks = jax.random.split(key, 8)

    def w(k, shape, scale):
        return jax.random.normal(k, shape, jnp.float32) * scale

    s = N ** -0.5
    return {
        "intra_mdl_w": w(ks[0], (N, N), s), "intra_mdl_b": w(ks[1], (N,), 0.1),
        "intra_lin_w": w(ks[2], (N, N), s), "intra_lin_b": w(ks[3], (N,), 0.1),
        "inter_mdl_w": w(ks[4], (N, N), s), "inter_mdl_b": w(ks[5], (N,), 0.1),
        "inter_lin_w": w(ks[6], (N, N), s), "inter_lin_b": w(ks[7], (N,), 0.1),
        "intra_norm_w": jnp.ones((N,), jnp.float32),
        "intra_norm_b": jnp.zeros((N,), jnp.float32),
        "inter_norm_w": jnp.ones((N,), jnp.float32),
        "inter_norm_b": jnp.zeros((N,), jnp.float32),
    }


if __name__ == "__main__":
    B, N, K, S = 2, 128, 16, 8   # N multiple of 128 -> lane-dense feature axis
    key = jax.random.PRNGKey(0)
    kx, kp = jax.random.split(key)
    x = jax.random.normal(kx, (B, N, K, S), jnp.float32)
    params = init_params(kp, N)

    fwd = jax.jit(dual_computation_block)
    out = jax.block_until_ready(fwd(x, params))

    assert out.shape == (B, N, K, S), out.shape
    assert out.dtype == jnp.float32, out.dtype
    assert bool(jnp.all(jnp.isfinite(out)))
    ref = _reference(x, params)
    assert bool(jnp.allclose(out, ref, atol=2e-3, rtol=2e-3)), \
        float(jnp.max(jnp.abs(out - ref)))
    print("KERNEL_OK")
</pallas_src>

<mosaic_0001>
module attributes {stable_mosaic.version = 11 : i64} {
  func.func @_intra_kernel(%arg0: i32, %arg1: i32, %arg2: memref<1x128x128xf32, #tpu.memory_space<vmem>>, %arg3: memref<128x128xbf16, #tpu.memory_space<vmem>>, %arg4: memref<1x128xf32, #tpu.memory_space<vmem>>, %arg5: memref<128x128xbf16, #tpu.memory_space<vmem>>, %arg6: memref<1x128xf32, #tpu.memory_space<vmem>>, %arg7: memref<1x128x128xbf16, #tpu.memory_space<vmem>>, %arg8: memref<1x2x128xf32, #tpu.memory_space<vmem>>) attributes {dimension_semantics = [#tpu.dimension_semantics<parallel>, #tpu.dimension_semantics<arbitrary>], iteration_bounds = array<i64: 2, 1>, scalar_prefetch = 0 : i64, scratch_operands = 0 : i64, tpu.core_type = #tpu.core_type<tc>, window_params = [{transform_indices = @transform_0, window_bounds = array<i64: 1, 128, 128>}, {pipeline_mode = #tpu.pipeline_mode<synchronous>, transform_indices = @transform_1, window_bounds = array<i64: 128, 128>}, {pipeline_mode = #tpu.pipeline_mode<synchronous>, transform_indices = @transform_2, window_bounds = array<i64: 1, 128>}, {pipeline_mode = #tpu.pipeline_mode<synchronous>, transform_indices = @transform_3, window_bounds = array<i64: 128, 128>}, {pipeline_mode = #tpu.pipeline_mode<synchronous>, transform_indices = @transform_4, window_bounds = array<i64: 1, 128>}, {transform_indices = @transform_5, window_bounds = array<i64: 1, 128, 128>}, {transform_indices = @transform_6, window_bounds = array<i64: 1, 2, 128>}]} {
    %c0 = arith.constant 0 : index
    %c0_0 = arith.constant 0 : index
    %c0_1 = arith.constant 0 : index
    %0 = vector.load %arg2[%c0, %c0_0, %c0_1] : memref<1x128x128xf32, #tpu.memory_space<vmem>>, vector<1x128x128xf32>
    %1 = vector.shape_cast %0 : vector<1x128x128xf32> to vector<128x128xf32>
    %2 = arith.truncf %1 : vector<128x128xf32> to vector<128x128xbf16>
    %c0_2 = arith.constant 0 : index
    %c0_3 = arith.constant 0 : index
    %3 = vector.load %arg3[%c0_2, %c0_3] : memref<128x128xbf16, #tpu.memory_space<vmem>>, vector<128x128xbf16>
    %cst = arith.constant dense<0.000000e+00> : vector<128x128xf32>
    %4 = tpu.matmul %2, %3, %cst {dimension_numbers = #tpu.dot_dimension_numbers<[1], [0], [0], [1], [0, 0, 1, 1], [], []>} : vector<128x128xbf16>, vector<128x128xbf16>, vector<128x128xf32> -> vector<128x128xf32>
    %c0_4 = arith.constant 0 : index
    %c0_5 = arith.constant 0 : index
    %5 = vector.load %arg4[%c0_4, %c0_5] : memref<1x128xf32, #tpu.memory_space<vmem>>, vector<1x128xf32>
    %6 = vector.broadcast %5 : vector<1x128xf32> to vector<128x128xf32>
    %7 = arith.addf %4, %6 : vector<128x128xf32>
    %cst_6 = arith.constant 0.000000e+00 : f32
    %8 = vector.broadcast %cst_6 : f32 to vector<128x128xf32>
    %9 = arith.maximumf %7, %8 : vector<128x128xf32>
    %10 = arith.truncf %9 : vector<128x128xf32> to vector<128x128xbf16>
    %c0_7 = arith.constant 0 : index
    %c0_8 = arith.constant 0 : index
    %11 = vector.load %arg5[%c0_7, %c0_8] : memref<128x128xbf16, #tpu.memory_space<vmem>>, vector<128x128xbf16>
    %cst_9 = arith.constant dense<0.000000e+00> : vector<128x128xf32>
    %12 = tpu.matmul %10, %11, %cst_9 {dimension_numbers = #tpu.dot_dimension_numbers<[1], [0], [0], [1], [0, 0, 1, 1], [], []>} : vector<128x128xbf16>, vector<128x128xbf16>, vector<128x128xf32> -> vector<128x128xf32>
    %c0_10 = arith.constant 0 : index
    %c0_11 = arith.constant 0 : index
    %13 = vector.load %arg6[%c0_10, %c0_11] : memref<1x128xf32, #tpu.memory_space<vmem>>, vector<1x128xf32>
    %14 = vector.broadcast %13 : vector<1x128xf32> to vector<128x128xf32>
    %15 = arith.addf %12, %14 : vector<128x128xf32>
    %16 = arith.truncf %15 : vector<128x128xf32> to vector<128x128xbf16>
    %c0_12 = arith.constant 0 : index
    %c0_13 = arith.constant 0 : index
    %c0_14 = arith.constant 0 : index
    %17 = vector.load %arg7[%c0_12, %c0_13, %c0_14] : memref<1x128x128xbf16, #tpu.memory_space<vmem>>, vector<1x128x128xbf16>
    %18 = vector.shape_cast %17 : vector<1x128x128xbf16> to vector<128x128xbf16>
    %19 = vector.shape_cast %16 : vector<128x128xbf16> to vector<1x128x128xbf16>
    tpu.vector_store %arg7[%c0_12, %c0_13, %c0_14], %19 {strides = array<i32>} : memref<1x128x128xbf16, #tpu.memory_space<vmem>>, vector<1x128x128xbf16>,
    %20 = vector.shape_cast %15 : vector<128x128xf32> to vector<1x128x128xf32>
    %cst_15 = arith.constant dense<0.000000e+00> : vector<1xf32>
    %21 = vector.multi_reduction <add>, %20, %cst_15 [1, 2] : vector<1x128x128xf32> to vector<1xf32>
    %22 = vector.shape_cast %21 : vector<1xf32> to vector<1x1x1xf32>
    %23 = vector.extract %22[0, 0, 0] : f32 from vector<1x1x1xf32>
    %24 = arith.mulf %15, %15 : vector<128x128xf32>
    %25 = vector.shape_cast %24 : vector<128x128xf32> to vector<1x128x128xf32>
    %cst_16 = arith.constant dense<0.000000e+00> : vector<1xf32>
    %26 = vector.multi_reduction <add>, %25, %cst_16 [1, 2] : vector<1x128x128xf32> to vector<1xf32>
    %27 = vector.shape_cast %26 : vector<1xf32> to vector<1x1x1xf32>
    %28 = vector.extract %27[0, 0, 0] : f32 from vector<1x1x1xf32>
    %29 = tpu.iota {dimensions = array<i32: 0>} : vector<2x128xi32>
    %c0_i32 = arith.constant 0 : i32
    %30 = vector.broadcast %c0_i32 : i32 to vector<2x128xi32>
    %31 = arith.cmpi eq, %29, %30 : vector<2x128xi32>
    %32 = vector.broadcast %23 : f32 to vector<2x128xf32>
    %33 = vector.broadcast %28 : f32 to vector<2x128xf32>
    %34 = arith.select %31, %32, %33 : vector<2x128xi1>, vector<2x128xf32>
    %c0_i32_17 = arith.constant 0 : i32
    %35 = arith.cmpi eq, %arg1, %c0_i32_17 : i32
    %36 = arith.extui %35 : i1 to i32
    %c0_i32_18 = arith.constant 0 : i32
    %37 = arith.cmpi ne, %36, %c0_i32_18 : i32
    scf.if %37 {
      %c0_21 = arith.constant 0 : index
      %c0_22 = arith.constant 0 : index
      %c0_23 = arith.constant 0 : index
      %41 = vector.load %arg8[%c0_21, %c0_22, %c0_23] : memref<1x2x128xf32, #tpu.memory_space<vmem>>, vector<1x2x128xf32>
      %42 = vector.shape_cast %41 : vector<1x2x128xf32> to vector<2x128xf32>
      %43 = vector.shape_cast %34 : vector<2x128xf32> to vector<1x2x128xf32>
      tpu.vector_store %arg8[%c0_21, %c0_22, %c0_23], %43 {strides = array<i32>} : memref<1x2x128xf32, #tpu.memory_space<vmem>>, vector<1x2x128xf32>,
    } else {
    }
    %c0_i32_19 = arith.constant 0 : i32
    %38 = arith.cmpi sgt, %arg1, %c0_i32_19 : i32
    %39 = arith.extui %38 : i1 to i32
    %c0_i32_20 = arith.constant 0 : i32
    %40 = arith.cmpi ne, %39, %c0_i32_20 : i32
    scf.if %40 {
      %c0_21 = arith.constant 0 : index
      %c0_22 = arith.constant 0 : index
      %c0_23 = arith.constant 0 : index
      %41 = vector.load %arg8[%c0_21, %c0_22, %c0_23] : memref<1x2x128xf32, #tpu.memory_space<vmem>>, vector<1x2x128xf32>
      %42 = vector.shape_cast %41 : vector<1x2x128xf32> to vector<2x128xf32>
      %43 = arith.addf %42, %34 : vector<2x128xf32>
      %c0_24 = arith.constant 0 : index
      %c0_25 = arith.constant 0 : index
      %c0_26 = arith.constant 0 : index
      %44 = vector.load %arg8[%c0_24, %c0_25, %c0_26] : memref<1x2x128xf32, #tpu.memory_space<vmem>>, vector<1x2x128xf32>
      %45 = vector.shape_cast %44 : vector<1x2x128xf32> to vector<2x128xf32>
      %46 = vector.shape_cast %43 : vector<2x128xf32> to vector<1x2x128xf32>
      tpu.vector_store %arg8[%c0_24, %c0_25, %c0_26], %46 {strides = array<i32>} : memref<1x2x128xf32, #tpu.memory_space<vmem>>, vector<1x2x128xf32>,
    } else {
    }
    return
  }
  func.func @transform_0(%arg0: i32, %arg1: i32) -> (i32, i32, i32) {
    %c0_i32 = arith.constant 0 : i32
    %c0_i32_0 = arith.constant 0 : i32
    return %arg0, %arg1, %c0_i32 : i32, i32, i32
  }
  func.func @transform_1(%arg0: i32, %arg1: i32) -> (i32, i32) {
    %c0_i32 = arith.constant 0 : i32
    %c0_i32_0 = arith.constant 0 : i32
    %c0_i32_1 = arith.constant 0 : i32
    return %c0_i32, %c0_i32_0 : i32, i32
  }
  func.func @transform_2(%arg0: i32, %arg1: i32) -> (i32, i32) {
    %c0_i32 = arith.constant 0 : i32
    %c0_i32_0 = arith.constant 0 : i32
    %c0_i32_1 = arith.constant 0 : i32
    return %c0_i32, %c0_i32_0 : i32, i32
  }
  func.func @transform_3(%arg0: i32, %arg1: i32) -> (i32, i32) {
    %c0_i32 = arith.constant 0 : i32
    %c0_i32_0 = arith.constant 0 : i32
    %c0_i32_1 = arith.constant 0 : i32
    return %c0_i32, %c0_i32_0 : i32, i32
  }
  func.func @transform_4(%arg0: i32, %arg1: i32) -> (i32, i32) {
    %c0_i32 = arith.constant 0 : i32
    %c0_i32_0 = arith.constant 0 : i32
    %c0_i32_1 = arith.constant 0 : i32
    return %c0_i32, %c0_i32_0 : i32, i32
  }
  func.func @transform_5(%arg0: i32, %arg1: i32) -> (i32, i32, i32) {
    %c0_i32 = arith.constant 0 : i32
    %c0_i32_0 = arith.constant 0 : i32
    return %arg0, %arg1, %c0_i32 : i32, i32, i32
  }
  func.func @transform_6(%arg0: i32, %arg1: i32) -> (i32, i32, i32) {
    %c0_i32 = arith.constant 0 : i32
    %c0_i32_0 = arith.constant 0 : i32
    %c0_i32_1 = arith.constant 0 : i32
    return %arg0, %c0_i32, %c0_i32_0 : i32, i32, i32
  }
}

module attributes {stable_mosaic.version = 11 : i64} {
  func.func @_finish_kernel(%arg0: i32, %arg1: i32, %arg2: memref<1x128x128xbf16, #tpu.memory_space<vmem>>, %arg3: memref<1x128x128xbf16, #tpu.memory_space<vmem>>, %arg4: memref<2x2xf32, #tpu.memory_space<smem>>, %arg5: memref<1x128xf32, #tpu.memory_space<vmem>>, %arg6: memref<1x128xf32, #tpu.memory_space<vmem>>, %arg7: memref<1x128x128xf32, #tpu.memory_space<vmem>>) attributes {dimension_semantics = [#tpu.dimension_semantics<parallel>, #tpu.dimension_semantics<parallel>], iteration_bounds = array<i64: 2, 1>, scalar_prefetch = 0 : i64, scratch_operands = 0 : i64, tpu.core_type = #tpu.core_type<tc>, window_params = [{transform_indices = @transform_0, window_bounds = array<i64: 1, 128, 128>}, {transform_indices = @transform_1, window_bounds = array<i64: 1, 128, 128>}, {transform_indices = @transform_2, window_bounds = array<i64: 2, 2>}, {pipeline_mode = #tpu.pipeline_mode<synchronous>, transform_indices = @transform_3, window_bounds = array<i64: 1, 128>}, {pipeline_mode = #tpu.pipeline_mode<synchronous>, transform_indices = @transform_4, window_bounds = array<i64: 1, 128>}, {transform_indices = @transform_5, window_bounds = array<i64: 1, 128, 128>}]} {
    %0 = arith.index_cast %arg0 : i32 to index
    %c0 = arith.constant 0 : index
    %1 = memref.load %arg4[%0, %c0] : memref<2x2xf32, #tpu.memory_space<smem>>
    %2 = arith.index_cast %arg0 : i32 to index
    %c1 = arith.constant 1 : index
    %3 = memref.load %arg4[%2, %c1] : memref<2x2xf32, #tpu.memory_space<smem>>
    %c0_0 = arith.constant 0 : index
    %c0_1 = arith.constant 0 : index
    %c0_2 = arith.constant 0 : index
    %4 = vector.load %arg2[%c0_0, %c0_1, %c0_2] : memref<1x128x128xbf16, #tpu.memory_space<vmem>>, vector<1x128x128xbf16>
    %5 = vector.shape_cast %4 : vector<1x128x128xbf16> to vector<128x128xbf16>
    %6 = arith.extf %5 : vector<128x128xbf16> to vector<128x128xf32>
    %7 = vector.broadcast %1 : f32 to vector<128x128xf32>
    %8 = arith.subf %6, %7 : vector<128x128xf32>
    %9 = vector.broadcast %3 : f32 to vector<128x128xf32>
    %10 = arith.mulf %8, %9 : vector<128x128xf32>
    %c0_3 = arith.constant 0 : index
    %c0_4 = arith.constant 0 : index
    %11 = vector.load %arg5[%c0_3, %c0_4] : memref<1x128xf32, #tpu.memory_space<vmem>>, vector<1x128xf32>
    %12 = vector.broadcast %11 : vector<1x128xf32> to vector<128x128xf32>
    %13 = arith.mulf %10, %12 : vector<128x128xf32>
    %c0_5 = arith.constant 0 : index
    %c0_6 = arith.constant 0 : index
    %14 = vector.load %arg6[%c0_5, %c0_6] : memref<1x128xf32, #tpu.memory_space<vmem>>, vector<1x128xf32>
    %15 = vector.broadcast %14 : vector<1x128xf32> to vector<128x128xf32>
    %16 = arith.addf %13, %15 : vector<128x128xf32>
    %c0_7 = arith.constant 0 : index
    %c0_8 = arith.constant 0 : index
    %c0_9 = arith.constant 0 : index
    %17 = vector.load %arg3[%c0_7, %c0_8, %c0_9] : memref<1x128x128xbf16, #tpu.memory_space<vmem>>, vector<1x128x128xbf16>
    %18 = vector.shape_cast %17 : vector<1x128x128xbf16> to vector<128x128xbf16>
    %19 = arith.extf %18 : vector<128x128xbf16> to vector<128x128xf32>
    %20 = arith.addf %16, %19 : vector<128x128xf32>
    %c0_10 = arith.constant 0 : index
    %c0_11 = arith.constant 0 : index
    %c0_12 = arith.constant 0 : index
    %21 = vector.load %arg7[%c0_10, %c0_11, %c0_12] : memref<1x128x128xf32, #tpu.memory_space<vmem>>, vector<1x128x128xf32>
    %22 = vector.shape_cast %21 : vector<1x128x128xf32> to vector<128x128xf32>
    %23 = vector.shape_cast %20 : vector<128x128xf32> to vector<1x128x128xf32>
    tpu.vector_store %arg7[%c0_10, %c0_11, %c0_12], %23 {strides = array<i32>} : memref<1x128x128xf32, #tpu.memory_space<vmem>>, vector<1x128x128xf32>,
    return
  }
  func.func @transform_0(%arg0: i32, %arg1: i32) -> (i32, i32, i32) {
    %c0_i32 = arith.constant 0 : i32
    %c0_i32_0 = arith.constant 0 : i32
    return %arg0, %arg1, %c0_i32 : i32, i32, i32
  }
  func.func @transform_1(%arg0: i32, %arg1: i32) -> (i32, i32, i32) {
    %c0_i32 = arith.constant 0 : i32
    %c0_i32_0 = arith.constant 0 : i32
    return %arg0, %arg1, %c0_i32 : i32, i32, i32
  }
  func.func @transform_2(%arg0: i32, %arg1: i32) -> (i32, i32) {
    %c0_i32 = arith.constant 0 : i32
    %c0_i32_0 = arith.constant 0 : i32
    %c0_i32_1 = arith.constant 0 : i32
    return %c0_i32, %c0_i32_0 : i32, i32
  }
  func.func @transform_3(%arg0: i32, %arg1: i32) -> (i32, i32) {
    %c0_i32 = arith.constant 0 : i32
    %c0_i32_0 = arith.constant 0 : i32
    %c0_i32_1 = arith.constant 0 : i32
    return %c0_i32, %c0_i32_0 : i32, i32
  }
  func.func @transform_4(%arg0: i32, %arg1: i32) -> (i32, i32) {
    %c0_i32 = arith.constant 0 : i32
    %c0_i32_0 = arith.constant 0 : i32
    %c0_i32_1 = arith.constant 0 : i32
    return %c0_i32, %c0_i32_0 : i32, i32
  }
  func.func @transform_5(%arg0: i32, %arg1: i32) -> (i32, i32, i32) {
    %c0_i32 = arith.constant 0 : i32
    %c0_i32_0 = arith.constant 0 : i32
    return %arg0, %arg1, %c0_i32 : i32, i32, i32
  }
}

module attributes {stable_mosaic.version = 11 : i64} {
  func.func @_inter_kernel(%arg0: i32, %arg1: i32, %arg2: memref<1x128x128xbf16, #tpu.memory_space<vmem>>, %arg3: memref<1x128x128xf32, #tpu.memory_space<vmem>>, %arg4: memref<2x2xf32, #tpu.memory_space<smem>>, %arg5: memref<1x128xf32, #tpu.memory_space<vmem>>, %arg6: memref<1x128xf32, #tpu.memory_space<vmem>>, %arg7: memref<128x128xbf16, #tpu.memory_space<vmem>>, %arg8: memref<1x128xf32, #tpu.memory_space<vmem>>, %arg9: memref<128x128xbf16, #tpu.memory_space<vmem>>, %arg10: memref<1x128xf32, #tpu.memory_space<vmem>>, %arg11: memref<1x128x128xbf16, #tpu.memory_space<vmem>>, %arg12: memref<1x128x128xbf16, #tpu.memory_space<vmem>>, %arg13: memref<1x2x128xf32, #tpu.memory_space<vmem>>) attributes {dimension_semantics = [#tpu.dimension_semantics<parallel>, #tpu.dimension_semantics<arbitrary>], iteration_bounds = array<i64: 2, 1>, scalar_prefetch = 0 : i64, scratch_operands = 0 : i64, tpu.core_type = #tpu.core_type<tc>, window_params = [{transform_indices = @transform_0, window_bounds = array<i64: 1, 128, 128>}, {transform_indices = @transform_1, window_bounds = array<i64: 1, 128, 128>}, {transform_indices = @transform_2, window_bounds = array<i64: 2, 2>}, {pipeline_mode = #tpu.pipeline_mode<synchronous>, transform_indices = @transform_3, window_bounds = array<i64: 1, 128>}, {pipeline_mode = #tpu.pipeline_mode<synchronous>, transform_indices = @transform_4, window_bounds = array<i64: 1, 128>}, {pipeline_mode = #tpu.pipeline_mode<synchronous>, transform_indices = @transform_5, window_bounds = array<i64: 128, 128>}, {pipeline_mode = #tpu.pipeline_mode<synchronous>, transform_indices = @transform_6, window_bounds = array<i64: 1, 128>}, {pipeline_mode = #tpu.pipeline_mode<synchronous>, transform_indices = @transform_7, window_bounds = array<i64: 128, 128>}, {pipeline_mode = #tpu.pipeline_mode<synchronous>, transform_indices = @transform_8, window_bounds = array<i64: 1, 128>}, {transform_indices = @transform_9, window_bounds = array<i64: 1, 128, 128>}, {transform_indices = @transform_10, window_bounds = array<i64: 1, 128, 128>}, {transform_indices = @transform_11, window_bounds = array<i64: 1, 2, 128>}]} {
    %0 = arith.index_cast %arg0 : i32 to index
    %c0 = arith.constant 0 : index
    %1 = memref.load %arg4[%0, %c0] : memref<2x2xf32, #tpu.memory_space<smem>>
    %2 = arith.index_cast %arg0 : i32 to index
    %c1 = arith.constant 1 : index
    %3 = memref.load %arg4[%2, %c1] : memref<2x2xf32, #tpu.memory_space<smem>>
    %c0_0 = arith.constant 0 : index
    %c0_1 = arith.constant 0 : index
    %c0_2 = arith.constant 0 : index
    %4 = vector.load %arg2[%c0_0, %c0_1, %c0_2] : memref<1x128x128xbf16, #tpu.memory_space<vmem>>, vector<1x128x128xbf16>
    %5 = vector.shape_cast %4 : vector<1x128x128xbf16> to vector<128x128xbf16>
    %6 = arith.extf %5 : vector<128x128xbf16> to vector<128x128xf32>
    %7 = vector.broadcast %1 : f32 to vector<128x128xf32>
    %8 = arith.subf %6, %7 : vector<128x128xf32>
    %9 = vector.broadcast %3 : f32 to vector<128x128xf32>
    %10 = arith.mulf %8, %9 : vector<128x128xf32>
    %c0_3 = arith.constant 0 : index
    %c0_4 = arith.constant 0 : index
    %11 = vector.load %arg5[%c0_3, %c0_4] : memref<1x128xf32, #tpu.memory_space<vmem>>, vector<1x128xf32>
    %12 = vector.broadcast %11 : vector<1x128xf32> to vector<128x128xf32>
    %13 = arith.mulf %10, %12 : vector<128x128xf32>
    %c0_5 = arith.constant 0 : index
    %c0_6 = arith.constant 0 : index
    %14 = vector.load %arg6[%c0_5, %c0_6] : memref<1x128xf32, #tpu.memory_space<vmem>>, vector<1x128xf32>
    %15 = vector.broadcast %14 : vector<1x128xf32> to vector<128x128xf32>
    %16 = arith.addf %13, %15 : vector<128x128xf32>
    %c0_7 = arith.constant 0 : index
    %c0_8 = arith.constant 0 : index
    %c0_9 = arith.constant 0 : index
    %17 = vector.load %arg3[%c0_7, %c0_8, %c0_9] : memref<1x128x128xf32, #tpu.memory_space<vmem>>, vector<1x128x128xf32>
    %18 = vector.shape_cast %17 : vector<1x128x128xf32> to vector<128x128xf32>
    %19 = arith.addf %16, %18 : vector<128x128xf32>
    %20 = arith.truncf %19 : vector<128x128xf32> to vector<128x128xbf16>
    %c0_10 = arith.constant 0 : index
    %c0_11 = arith.constant 0 : index
    %c0_12 = arith.constant 0 : index
    %21 = vector.load %arg11[%c0_10, %c0_11, %c0_12] : memref<1x128x128xbf16, #tpu.memory_space<vmem>>, vector<1x128x128xbf16>
    %22 = vector.shape_cast %21 : vector<1x128x128xbf16> to vector<128x128xbf16>
    %23 = vector.shape_cast %20 : vector<128x128xbf16> to vector<1x128x128xbf16>
    tpu.vector_store %arg11[%c0_10, %c0_11, %c0_12], %23 {strides = array<i32>} : memref<1x128x128xbf16, #tpu.memory_space<vmem>>, vector<1x128x128xbf16>,
    %c0_13 = arith.constant 0 : index
    %c0_14 = arith.constant 0 : index
    %24 = vector.load %arg7[%c0_13, %c0_14] : memref<128x128xbf16, #tpu.memory_space<vmem>>, vector<128x128xbf16>
    %cst = arith.constant dense<0.000000e+00> : vector<128x128xf32>
    %25 = tpu.matmul %20, %24, %cst {dimension_numbers = #tpu.dot_dimension_numbers<[1], [0], [0], [1], [0, 0, 1, 1], [], []>} : vector<128x128xbf16>, vector<128x128xbf16>, vector<128x128xf32> -> vector<128x128xf32>
    %c0_15 = arith.constant 0 : index
    %c0_16 = arith.constant 0 : index
    %26 = vector.load %arg8[%c0_15, %c0_16] : memref<1x128xf32, #tpu.memory_space<vmem>>, vector<1x128xf32>
    %27 = vector.broadcast %26 : vector<1x128xf32> to vector<128x128xf32>
    %28 = arith.addf %25, %27 : vector<128x128xf32>
    %cst_17 = arith.constant 0.000000e+00 : f32
    %29 = vector.broadcast %cst_17 : f32 to vector<128x128xf32>
    %30 = arith.maximumf %28, %29 : vector<128x128xf32>
    %31 = arith.truncf %30 : vector<128x128xf32> to vector<128x128xbf16>
    %c0_18 = arith.constant 0 : index
    %c0_19 = arith.constant 0 : index
    %32 = vector.load %arg9[%c0_18, %c0_19] : memref<128x128xbf16, #tpu.memory_space<vmem>>, vector<128x128xbf16>
    %cst_20 = arith.constant dense<0.000000e+00> : vector<128x128xf32>
    %33 = tpu.matmul %31, %32, %cst_20 {dimension_numbers = #tpu.dot_dimension_numbers<[1], [0], [0], [1], [0, 0, 1, 1], [], []>} : vector<128x128xbf16>, vector<128x128xbf16>, vector<128x128xf32> -> vector<128x128xf32>
    %c0_21 = arith.constant 0 : index
    %c0_22 = arith.constant 0 : index
    %34 = vector.load %arg10[%c0_21, %c0_22] : memref<1x128xf32, #tpu.memory_space<vmem>>, vector<1x128xf32>
    %35 = vector.broadcast %34 : vector<1x128xf32> to vector<128x128xf32>
    %36 = arith.addf %33, %35 : vector<128x128xf32>
    %37 = arith.truncf %36 : vector<128x128xf32> to vector<128x128xbf16>
    %c0_23 = arith.constant 0 : index
    %c0_24 = arith.constant 0 : index
    %c0_25 = arith.constant 0 : index
    %38 = vector.load %arg12[%c0_23, %c0_24, %c0_25] : memref<1x128x128xbf16, #tpu.memory_space<vmem>>, vector<1x128x128xbf16>
    %39 = vector.shape_cast %38 : vector<1x128x128xbf16> to vector<128x128xbf16>
    %40 = vector.shape_cast %37 : vector<128x128xbf16> to vector<1x128x128xbf16>
    tpu.vector_store %arg12[%c0_23, %c0_24, %c0_25], %40 {strides = array<i32>} : memref<1x128x128xbf16, #tpu.memory_space<vmem>>, vector<1x128x128xbf16>,
    %41 = vector.shape_cast %36 : vector<128x128xf32> to vector<1x128x128xf32>
    %cst_26 = arith.constant dense<0.000000e+00> : vector<1xf32>
    %42 = vector.multi_reduction <add>, %41, %cst_26 [1, 2] : vector<1x128x128xf32> to vector<1xf32>
    %43 = vector.shape_cast %42 : vector<1xf32> to vector<1x1x1xf32>
    %44 = vector.extract %43[0, 0, 0] : f32 from vector<1x1x1xf32>
    %45 = arith.mulf %36, %36 : vector<128x128xf32>
    %46 = vector.shape_cast %45 : vector<128x128xf32> to vector<1x128x128xf32>
    %cst_27 = arith.constant dense<0.000000e+00> : vector<1xf32>
    %47 = vector.multi_reduction <add>, %46, %cst_27 [1, 2] : vector<1x128x128xf32> to vector<1xf32>
    %48 = vector.shape_cast %47 : vector<1xf32> to vector<1x1x1xf32>
    %49 = vector.extract %48[0, 0, 0] : f32 from vector<1x1x1xf32>
    %50 = tpu.iota {dimensions = array<i32: 0>} : vector<2x128xi32>
    %c0_i32 = arith.constant 0 : i32
    %51 = vector.broadcast %c0_i32 : i32 to vector<2x128xi32>
    %52 = arith.cmpi eq, %50, %51 : vector<2x128xi32>
    %53 = vector.broadcast %44 : f32 to vector<2x128xf32>
    %54 = vector.broadcast %49 : f32 to vector<2x128xf32>
    %55 = arith.select %52, %53, %54 : vector<2x128xi1>, vector<2x128xf32>
    %c0_i32_28 = arith.constant 0 : i32
    %56 = arith.cmpi eq, %arg1, %c0_i32_28 : i32
    %57 = arith.extui %56 : i1 to i32
    %c0_i32_29 = arith.constant 0 : i32
    %58 = arith.cmpi ne, %57, %c0_i32_29 : i32
    scf.if %58 {
      %c0_32 = arith.constant 0 : index
      %c0_33 = arith.constant 0 : index
      %c0_34 = arith.constant 0 : index
      %62 = vector.load %arg13[%c0_32, %c0_33, %c0_34] : memref<1x2x128xf32, #tpu.memory_space<vmem>>, vector<1x2x128xf32>
      %63 = vector.shape_cast %62 : vector<1x2x128xf32> to vector<2x128xf32>
      %64 = vector.shape_cast %55 : vector<2x128xf32> to vector<1x2x128xf32>
      tpu.vector_store %arg13[%c0_32, %c0_33, %c0_34], %64 {strides = array<i32>} : memref<1x2x128xf32, #tpu.memory_space<vmem>>, vector<1x2x128xf32>,
    } else {
    }
    %c0_i32_30 = arith.constant 0 : i32
    %59 = arith.cmpi sgt, %arg1, %c0_i32_30 : i32
    %60 = arith.extui %59 : i1 to i32
    %c0_i32_31 = arith.constant 0 : i32
    %61 = arith.cmpi ne, %60, %c0_i32_31 : i32
    scf.if %61 {
      %c0_32 = arith.constant 0 : index
      %c0_33 = arith.constant 0 : index
      %c0_34 = arith.constant 0 : index
      %62 = vector.load %arg13[%c0_32, %c0_33, %c0_34] : memref<1x2x128xf32, #tpu.memory_space<vmem>>, vector<1x2x128xf32>
      %63 = vector.shape_cast %62 : vector<1x2x128xf32> to vector<2x128xf32>
      %64 = arith.addf %63, %55 : vector<2x128xf32>
      %c0_35 = arith.constant 0 : index
      %c0_36 = arith.constant 0 : index
      %c0_37 = arith.constant 0 : index
      %65 = vector.load %arg13[%c0_35, %c0_36, %c0_37] : memref<1x2x128xf32, #tpu.memory_space<vmem>>, vector<1x2x128xf32>
      %66 = vector.shape_cast %65 : vector<1x2x128xf32> to vector<2x128xf32>
      %67 = vector.shape_cast %64 : vector<2x128xf32> to vector<1x2x128xf32>
      tpu.vector_store %arg13[%c0_35, %c0_36, %c0_37], %67 {strides = array<i32>} : memref<1x2x128xf32, #tpu.memory_space<vmem>>, vector<1x2x128xf32>,
    } else {
    }
    return
  }
  func.func @transform_0(%arg0: i32, %arg1: i32) -> (i32, i32, i32) {
    %c0_i32 = arith.constant 0 : i32
    %c0_i32_0 = arith.constant 0 : i32
    return %arg0, %arg1, %c0_i32 : i32, i32, i32
  }
  func.func @transform_1(%arg0: i32, %arg1: i32) -> (i32, i32, i32) {
    %c0_i32 = arith.constant 0 : i32
    %c0_i32_0 = arith.constant 0 : i32
    return %arg0, %arg1, %c0_i32 : i32, i32, i32
  }
  func.func @transform_2(%arg0: i32, %arg1: i32) -> (i32, i32) {
    %c0_i32 = arith.constant 0 : i32
    %c0_i32_0 = arith.constant 0 : i32
    %c0_i32_1 = arith.constant 0 : i32
    return %c0_i32, %c0_i32_0 : i32, i32
  }
  func.func @transform_3(%arg0: i32, %arg1: i32) -> (i32, i32) {
    %c0_i32 = arith.constant 0 : i32
    %c0_i32_0 = arith.constant 0 : i32
    %c0_i32_1 = arith.constant 0 : i32
    return %c0_i32, %c0_i32_0 : i32, i32
  }
  func.func @transform_4(%arg0: i32, %arg1: i32) -> (i32, i32) {
    %c0_i32 = arith.constant 0 : i32
    %c0_i32_0 = arith.constant 0 : i32
    %c0_i32_1 = arith.constant 0 : i32
    return %c0_i32, %c0_i32_0 : i32, i32
  }
  func.func @transform_5(%arg0: i32, %arg1: i32) -> (i32, i32) {
    %c0_i32 = arith.constant 0 : i32
    %c0_i32_0 = arith.constant 0 : i32
    %c0_i32_1 = arith.constant 0 : i32
    return %c0_i32, %c0_i32_0 : i32, i32
  }
  func.func @transform_6(%arg0: i32, %arg1: i32) -> (i32, i32) {
    %c0_i32 = arith.constant 0 : i32
    %c0_i32_0 = arith.constant 0 : i32
    %c0_i32_1 = arith.constant 0 : i32
    return %c0_i32, %c0_i32_0 : i32, i32
  }
  func.func @transform_7(%arg0: i32, %arg1: i32) -> (i32, i32) {
    %c0_i32 = arith.constant 0 : i32
    %c0_i32_0 = arith.constant 0 : i32
    %c0_i32_1 = arith.constant 0 : i32
    return %c0_i32, %c0_i32_0 : i32, i32
  }
  func.func @transform_8(%arg0: i32, %arg1: i32) -> (i32, i32) {
    %c0_i32 = arith.constant 0 : i32
    %c0_i32_0 = arith.constant 0 : i32
    %c0_i32_1 = arith.constant 0 : i32
    return %c0_i32, %c0_i32_0 : i32, i32
  }
  func.func @transform_9(%arg0: i32, %arg1: i32) -> (i32, i32, i32) {
    %c0_i32 = arith.constant 0 : i32
    %c0_i32_0 = arith.constant 0 : i32
    return %arg0, %arg1, %c0_i32 : i32, i32, i32
  }
  func.func @transform_10(%arg0: i32, %arg1: i32) -> (i32, i32, i32) {
    %c0_i32 = arith.constant 0 : i32
    %c0_i32_0 = arith.constant 0 : i32
    return %arg0, %arg1, %c0_i32 : i32, i32, i32
  }
  func.func @transform_11(%arg0: i32, %arg1: i32) -> (i32, i32, i32) {
    %c0_i32 = arith.constant 0 : i32
    %c0_i32_0 = arith.constant 0 : i32
    %c0_i32_1 = arith.constant 0 : i32
    return %arg0, %c0_i32, %c0_i32_0 : i32, i32, i32
  }
}

</mosaic_0001>

<bundles_post_ra>
// kernel: dual_computation_block.5
= control target key start
LH: loop header
LB: loop body
LE: loop exit
PB: predicated region body
PF: predicated region fallthrough
CT: control target
= control target key end

     0   :  { %10 = vsyncpa [#allocation4], 0  ;;  %s1180_s0 = inlined_call_operand.vmem [shape: bf16[2,128,128], index: 0, kind: input, shape index: {}]   ;;  %s1181_s1 = inlined_call_operand.vmem [shape: bf16[2,128,128], index: 1, kind: input, shape index: {}]   ;;  %s1182_s2 = inlined_call_operand.vmem [shape: f32[2,2], index: 2, kind: input, shape index: {}]   ;;  %s1183_s3 = inlined_call_operand.vmem [shape: f32[1,128], index: 3, kind: input, shape index: {}]   ;;  %s1184_s4 = inlined_call_operand.vmem [shape: f32[1,128], index: 4, kind: input, shape index: {}]   ;;  %s1185_s5 = inlined_call_operand.hbm [shape: f32[2,128,128], index: 5, kind: output, shape index: {}]  }
   0x1   :  { %11 = vsyncpa [#allocation3], 0 }
   0x2   :  { %13 = vsyncpa [#allocation3 + $0x1], 0  ;;  %s911_s18 = smov 0   ;;  %s913_s19 = smov 0  }
   0x3   :  { %s915_s20 = smov 0   ;;  %s917_s21 = smov 0  }
   0x4   :  { %s919_s22 = smov 0   ;;  %s921_s23 = smov 0  }
   0x5 LB: > { %s609_s24 = sadd.s32 4294967295, %s875_s23   ;;  %s610_s25 = sadd.s32 4294967294, %s875_s23   ;;  %s875_s23 = sphi %s921_s23, %s19_s23   ;;  %s871_s22 = sphi %s919_s22, %s1194_s22   ;;  %s867_s21 = sphi %s917_s21, %s1193_s21   ;;  %s863_s20 = sphi %s915_s20, %s1192_s20   ;;  %s859_s19 = sphi %s913_s19, %s1191_s19   ;;  %s855_s18 = sphi %s911_s18, %s1190_s18  }
   0x6   : > { %s31_s26 = sadd.s32 1, %s871_s22  ;;  %s159_s27 = sadd.s32 1, %s863_s20 }
   0x7   : > { %p33_p0 = scmp.ge.s32.totalorder %s31_s26, 2  ;;  %p169_p1 = scmp.ne.s32.totalorder %s863_s20, %s859_s19 }
   0x8   : > { %p170_p2 = scmp.eq.s32.totalorder %s609_s24, 1  ;;  %p175_p3 = scmp.ne.s32.totalorder %s859_s19, %s855_s18 }
   0x9   : > { %s1196_s26 = smov (%p33_p0, %s31_s26), 0  ;;  %p176_p5 = scmp.eq.s32.totalorder %s610_s25, 1 }
   0xa   : > { %p951_p4 = por %p170_p2, %p169_p1  ;;  %s154_s29 = ssub.s32 %s871_s22, %s1196_s26 }
   0xb   : > { %p611_p6 = scmp.ge.s32.totalorder %s875_s23, 1  ;;  %p157_p7 = scmp.eq.s32.totalorder %s154_s29, 0 }
   0xc   : > { %p958_p8 = por %p176_p5, %p175_p3  ;;  %p183_p9 = scmp.lt.s32.totalorder %s875_s23, 3 }
   0xd   : > { %s964_s6 = scalar_select %p157_p7, %s863_s20, %s159_s27  }
   0xe   : > { %p966_p10 = pnand %p611_p6, %p183_p9  ;;  %p970_p11 = scmp.eq.s32.totalorder %s609_s24, 0 }
   0xf   : > { %s196_s11 = sshll.u32 %s1182_s2, 4  ;;  %s197_s11 = int_to_ptr.vmem [resolvable:$true] %s196_s11 }
  0x10   : > { %p716_p12 = pneg %p966_p10  ;;  %s778_s12 = scalar_lea.vmem %s197_s11, 32 }
  0x11   : > { %p779_p0 = scmp.ne.s32.totalorder %s197_s11, %s778_s12  ;;  %p786_p5 = scmp.lt.s32.totalorder %s197_s11, %s197_s11 }
  0x12   : > { %p717_p13 = pnand %p970_p11, %p716_p12  ;;  %p787_p6 = scmp.lt.s32.totalorder %s778_s12, %s778_s12 }
  0x14   : > { %p780_p1 = pneg %p717_p13  ;;  %p788_p7 = por %p787_p6, %p786_p5 }
  0x16   : > { %p781_p2 = pnand %p780_p1, %p779_p0 }
  0x18   : > { %p782_p3 = pneg %p781_p2 }
  0x1a   : > { %p789_p9 = pnand %p788_p7, %p782_p3 }
  0x1c   : > { %792 = shalt.err (!%p789_p9)
}
  0x1d   : > { %s877_s13 = smov [#allocation2]   ;;  %241 = sbr.rel (%p966_p10) target bundleno = 95 (0x5f), region = 40 }
  0x1e   : > { %719 = dma.vmem_to_smem (!%p717_p13), %s197_s11, 32, %s877_s13, [#allocation4]  }
  0x24   : > { %846 = dma.done.wait (%p970_p11), [#allocation4], 32  }
  0x25   : > { %848 = vsyncadd (%p970_p11), [#allocation4], 4294967264 }
  0x26   : > { %247 = sfence }
  0x27   : > { %p284_p12 = scmp.lt.s32.totalorder %s867_s21, 1  ;;  %s621_s14 = sshll.u32 %s867_s21, 7  ;;  %v1019_v20 = vld [vmem:[%s1183_s3] ss:$0 sm:$0xff] }
  0x28   : > { %s305_s15 = sld [smem:[#allocation2 + %s621_s14]]  ;;  %s306_s17 = sadd.s32 1, %s621_s14  ;;  %v1033_v29 = vld [vmem:[%s1184_s4] ss:$0 sm:$0xff] }
  0x29   : > { %s285_s16 = scalar_select %p284_p12, %s867_s21, 1 }
  0x2a   : > { %s307_s25 = sld [smem:[#allocation2 + %s306_s17]]  ;;  %s280_s11 = sand.u32 1, %s859_s19  }
  0x2b   : > { %s629_s24 = sshll.u32 %s285_s16, 6  ;;  %s616_s16 = sshll.u32 %s280_s11, 7 }
  0x2c   : > { %s993_s7 = scalar_lea.vmem %s1180_s0, %s629_s24  ;;  %s998_s8 = scalar_lea.vmem %s1181_s1, %s629_s24 }
  0x2d   : > { %v633_v0 = vld [vmem:[%s993_s7] sm:$0xff]   ;;  %v696_v2 = vld [vmem:[%s993_s7 + $0x8] sm:$0xff]   ;;  %v697_v8 = vld [vmem:[%s993_s7 + $0x10] sm:$0xff]   ;;  %s1061_s17 = scalar_lea.vmem [#allocation5], %s616_s16  ;;  %s631_s24 = sshll.u32 %s867_s21, 11 }
  0x2e   : > { %v665_v1 = vld [vmem:[%s998_s8] sm:$0xff]   ;;  %v634_v3 = vunpack.c.l.bf16 %v633_v0  ;;  %v1003_v4 = vstv %s305_s15  ;;  %v635_v6 = vunpack.c.h.bf16 %v633_v0  ;;  %v703_v7 = vld [vmem:[%s998_s8 + $0x8] sm:$0xff]   ;;  %v1008_v9 = vld [vmem:[%s998_s8 + $0x10] sm:$0xff]   ;;  %v638_v11 = vunpack.c.l.bf16 %v696_v2  ;;  %s1134_s21 = scalar_lea.sflag [#allocation3], %s280_s11  ;;  %s878_s10 = smov [#allocation5]  }
  0x2f   : > { %v666_v5 = vunpack.c.l.bf16 %v665_v1  ;;  %v667_v10 = vunpack.c.h.bf16 %v665_v1  ;;  %v670_v12 = vunpack.c.l.bf16 %v703_v7  ;;  %v639_v13 = vunpack.c.h.bf16 %v696_v2  ;;  %v698_v18 = vld [vmem:[%s993_s7 + $0x18] sm:$0xff]   ;;  %v699_v50 = vld [vmem:[%s993_s7 + $0x20] sm:$0xff]   ;;  %v700_v59 = vld [vmem:[%s993_s7 + $0x28] sm:$0xff]  }
  0x30   : > { %v341_v14 = vsub.f32 %v634_v3, %v1003_v4  ;;  %v342_v15 = vsub.f32 %v635_v6, %v1003_v4  ;;  %v671_v16 = vunpack.c.h.bf16 %v703_v7  ;;  %v642_v17 = vunpack.c.l.bf16 %v697_v8  ;;  %v1028_v28 = vld [vmem:[%s998_s8 + $0x18] sm:$0xff]   ;;  %v706_v63 = vld [vmem:[%s998_s8 + $0x20] sm:$0xff]  }
  0x31   : > { %v1014_v19 = vstv %s307_s25  ;;  %v343_v21 = vsub.f32 %v638_v11, %v1003_v4  ;;  %v344_v22 = vsub.f32 %v639_v13, %v1003_v4  ;;  %v674_v23 = vunpack.c.l.bf16 %v1008_v9  ;;  %s500_s25 = sshll.u32 %s1061_s17, 4  ;;  %s1128_s25 = int_to_ptr.vmem [resolvable:$true] %s500_s25 }
  0x32   : > { %v358_v24 = vmul.f32 %v1014_v19, %v341_v14  ;;  %v359_v25 = vmul.f32 %v1014_v19, %v342_v15  ;;  %v345_v26 = vsub.f32 %v642_v17, %v1003_v4  ;;  %v643_v27 = vunpack.c.h.bf16 %v697_v8  ;;  %v707_v8 = vld [vmem:[%s998_s8 + $0x28] sm:$0xff]   ;;  %s793_s9 = scalar_lea.vmem %s1128_s25, 2048 }
  0x33   : > { %v360_v30 = vmul.f32 %v1014_v19, %v343_v21  ;;  %v361_v31 = vmul.f32 %v1014_v19, %v344_v22  ;;  %v675_v32 = vunpack.c.h.bf16 %v1008_v9  ;;  %v646_v33 = vunpack.c.l.bf16 %v698_v18  ;;  %v701_v9 = vld [vmem:[%s993_s7 + $0x30] sm:$0xff]   ;;  %p794_p10 = scmp.ne.s32.totalorder %s1128_s25, %s793_s9 }
  0x34   : > { %v381_v34 = vmul.f32 %v1019_v20, %v358_v24  ;;  %v382_v35 = vmul.f32 %v1019_v20, %v359_v25  ;;  %v362_v36 = vmul.f32 %v1014_v19, %v345_v26  ;;  %v346_v37 = vsub.f32 %v643_v27, %v1003_v4  ;;  %v708_v27 = vld [vmem:[%s998_s8 + $0x30] sm:$0xff]  }
  0x35   : > { %v383_v38 = vmul.f32 %v1019_v20, %v360_v30  ;;  %v384_v39 = vmul.f32 %v1019_v20, %v361_v31  ;;  %v347_v40 = vsub.f32 %v646_v33, %v1003_v4  ;;  %v678_v41 = vunpack.c.l.bf16 %v1028_v28  ;;  %v702_v30 = vld [vmem:[%s993_s7 + $0x38] sm:$0xff]   ;;  %s1126_s7 = scalar_lea.hbm %s1185_s5, %s631_s24  ;;  %p795_p11 = pnand %p794_p10, %p951_p4 }
  0x36   : > { %v404_v42 = vadd.f32 %v1033_v29, %v381_v34  ;;  %v405_v43 = vadd.f32 %v1033_v29, %v382_v35  ;;  %v385_v44 = vmul.f32 %v1019_v20, %v362_v36  ;;  %v363_v45 = vmul.f32 %v1014_v19, %v346_v37 }
  0x37   : > { %v406_v46 = vadd.f32 %v1033_v29, %v383_v38  ;;  %v407_v47 = vadd.f32 %v1033_v29, %v384_v39  ;;  %v364_v48 = vmul.f32 %v1014_v19, %v347_v40  ;;  %v647_v49 = vunpack.c.h.bf16 %v698_v18  ;;  %p796_p13 = pneg %p795_p11 }
  0x38   : > { %v452_v51 = vadd.f32 %v666_v5, %v404_v42  ;;  %v453_v52 = vadd.f32 %v667_v10, %v405_v43  ;;  %v408_v53 = vadd.f32 %v1033_v29, %v385_v44  ;;  %v386_v54 = vmul.f32 %v1019_v20, %v363_v45 }
  0x39   : > { %v454_v55 = vadd.f32 %v670_v12, %v406_v46  ;;  %v455_v56 = vadd.f32 %v671_v16, %v407_v47  ;;  %v387_v57 = vmul.f32 %v1019_v20, %v364_v48  ;;  %v348_v58 = vsub.f32 %v647_v49, %v1003_v4 }
  0x3a   : > { %468 = vst [vmem:[%s1061_s17] sm:$0xff] %v452_v51  ;;  %469 = vst [vmem:[%s1061_s17 + $0x8] sm:$0xff] %v453_v52  ;;  %v456_v60 = vadd.f32 %v674_v23, %v408_v53  ;;  %v409_v61 = vadd.f32 %v1033_v29, %v386_v54  ;;  %v650_v62 = vunpack.c.l.bf16 %v699_v50  ;;  %v651_v2 = vunpack.c.h.bf16 %v699_v50 }
  0x3b   : > { %470 = vst [vmem:[%s1061_s17 + $0x10] sm:$0xff] %v454_v55  ;;  %471 = vst [vmem:[%s1061_s17 + $0x18] sm:$0xff] %v455_v56  ;;  %v410_v0 = vadd.f32 %v1033_v29, %v387_v57  ;;  %v365_v1 = vmul.f32 %v1014_v19, %v348_v58  ;;  %v679_v5 = vunpack.c.h.bf16 %v1028_v28  ;;  %v654_v7 = vunpack.c.l.bf16 %v700_v59  ;;  %v709_v55 = vld [vmem:[%s998_s8 + $0x38] sm:$0xff]   ;;  %s797_s8 = sshll.u32 %s878_s10, 4  ;;  %s798_s8 = int_to_ptr.vmem [resolvable:$false] %s797_s8 }
  0x3c   : > { %472 = vst [vmem:[%s1061_s17 + $0x20] sm:$0xff] %v456_v60  ;;  %v457_v3 = vadd.f32 %v675_v32, %v409_v61  ;;  %v349_v6 = vsub.f32 %v650_v62, %v1003_v4  ;;  %v682_v12 = vunpack.c.l.bf16 %v706_v63  ;;  %v350_v13 = vsub.f32 %v651_v2, %v1003_v4  ;;  %s799_s12 = scalar_lea.vmem %s798_s8, 4096  ;;  %p800_p0 = scmp.lt.s32.totalorder %s1128_s25, %s798_s8 }
  0x3d   : > { %v458_v10 = vadd.f32 %v678_v41, %v410_v0  ;;  %v388_v11 = vmul.f32 %v1019_v20, %v365_v1  ;;  %v683_v15 = vunpack.c.h.bf16 %v706_v63  ;;  %v351_v16 = vsub.f32 %v654_v7, %v1003_v4  ;;  %p801_p1 = scmp.lt.s32.totalorder %s799_s12, %s793_s9 }
  0x3e   : > { %473 = vst [vmem:[%s1061_s17 + $0x28] sm:$0xff] %v457_v3  ;;  %v366_v14 = vmul.f32 %v1014_v19, %v349_v6  ;;  %v655_v17 = vunpack.c.h.bf16 %v700_v59  ;;  %v367_v21 = vmul.f32 %v1014_v19, %v350_v13  ;;  %v686_v22 = vunpack.c.l.bf16 %v707_v8 }
  0x3f   : > { %474 = vst [vmem:[%s1061_s17 + $0x30] sm:$0xff] %v458_v10  ;;  %v411_v18 = vadd.f32 %v1033_v29, %v388_v11  ;;  %v658_v23 = vunpack.c.l.bf16 %v701_v9  ;;  %v368_v25 = vmul.f32 %v1014_v19, %v351_v16  ;;  %v659_v28 = vunpack.c.h.bf16 %v701_v9  ;;  %p802_p2 = por %p801_p1, %p800_p0 }
  0x40   : > { %v389_v24 = vmul.f32 %v1019_v20, %v366_v14  ;;  %v352_v26 = vsub.f32 %v655_v17, %v1003_v4  ;;  %v390_v32 = vmul.f32 %v1019_v20, %v367_v21  ;;  %v687_v33 = vunpack.c.h.bf16 %v707_v8 }
  0x41   : > { %v459_v31 = vadd.f32 %v679_v5, %v411_v18  ;;  %v353_v34 = vsub.f32 %v658_v23, %v1003_v4  ;;  %v391_v36 = vmul.f32 %v1019_v20, %v368_v25  ;;  %v354_v38 = vsub.f32 %v659_v28, %v1003_v4  ;;  %p803_p3 = pnand %p802_p2, %p796_p13 }
  0x42   : > { %v412_v35 = vadd.f32 %v1033_v29, %v389_v24  ;;  %v369_v37 = vmul.f32 %v1014_v19, %v352_v26  ;;  %v413_v39 = vadd.f32 %v1033_v29, %v390_v32  ;;  %v690_v41 = vunpack.c.l.bf16 %v708_v27 }
  0x43   : > { %475 = vst [vmem:[%s1061_s17 + $0x38] sm:$0xff] %v459_v31  ;;  %v370_v40 = vmul.f32 %v1014_v19, %v353_v34  ;;  %v662_v42 = vunpack.c.l.bf16 %v702_v30  ;;  %v414_v44 = vadd.f32 %v1033_v29, %v391_v36  ;;  %v371_v46 = vmul.f32 %v1014_v19, %v354_v38 }
  0x44   : > { %v460_v43 = vadd.f32 %v682_v12, %v412_v35  ;;  %v392_v45 = vmul.f32 %v1019_v20, %v369_v37  ;;  %v461_v47 = vadd.f32 %v683_v15, %v413_v39  ;;  %v663_v50 = vunpack.c.h.bf16 %v702_v30 }
  0x45   : > { %v393_v48 = vmul.f32 %v1019_v20, %v370_v40  ;;  %v355_v49 = vsub.f32 %v662_v42, %v1003_v4  ;;  %v462_v51 = vadd.f32 %v686_v22, %v414_v44  ;;  %v394_v53 = vmul.f32 %v1019_v20, %v371_v46 }
  0x46   : > { %476 = vst [vmem:[%s1061_s17 + $0x40] sm:$0xff] %v460_v43  ;;  %v415_v52 = vadd.f32 %v1033_v29, %v392_v45  ;;  %v691_v54 = vunpack.c.h.bf16 %v708_v27  ;;  %477 = vst [vmem:[%s1061_s17 + $0x48] sm:$0xff] %v461_v47  ;;  %v356_v58 = vsub.f32 %v663_v50, %v1003_v4  ;;  %v694_v63 = vunpack.c.l.bf16 %v709_v55 }
  0x47   : > { %v416_v56 = vadd.f32 %v1033_v29, %v393_v48  ;;  %v372_v57 = vmul.f32 %v1014_v19, %v355_v49  ;;  %478 = vst [vmem:[%s1061_s17 + $0x50] sm:$0xff] %v462_v51  ;;  %v417_v60 = vadd.f32 %v1033_v29, %v394_v53  ;;  %v695_v3 = vunpack.c.h.bf16 %v709_v55 }
  0x48   : > { %v463_v59 = vadd.f32 %v687_v33, %v415_v52  ;;  %v373_v0 = vmul.f32 %v1014_v19, %v356_v58 }
  0x49   : > { %v464_v61 = vadd.f32 %v690_v41, %v416_v56  ;;  %v395_v62 = vmul.f32 %v1019_v20, %v372_v57  ;;  %v465_v1 = vadd.f32 %v691_v54, %v417_v60 }
  0x4a   : > { %479 = vst [vmem:[%s1061_s17 + $0x58] sm:$0xff] %v463_v59  ;;  %v396_v4 = vmul.f32 %v1019_v20, %v373_v0 }
  0x4b   : > { %480 = vst [vmem:[%s1061_s17 + $0x60] sm:$0xff] %v464_v61  ;;  %v418_v2 = vadd.f32 %v1033_v29, %v395_v62  ;;  %481 = vst [vmem:[%s1061_s17 + $0x68] sm:$0xff] %v465_v1 }
  0x4c   : > { %v419_v6 = vadd.f32 %v1033_v29, %v396_v4 }
  0x4d   : > { %v466_v5 = vadd.f32 %v694_v63, %v418_v2 }
  0x4e   : > { %v467_v19 = vadd.f32 %v695_v3, %v419_v6 }
  0x4f   : > { %482 = vst [vmem:[%s1061_s17 + $0x70] sm:$0xff] %v466_v5 }
  0x50   : > { %483 = vst [vmem:[%s1061_s17 + $0x78] sm:$0xff] %v467_v19 }
  0x51   : > { %806 = shalt.err (!%p803_p3)
}
  0x52   : > { %s807_s11 = scalar_lea.hbm %s1126_s7, 2048  ;;  %s811_s15 = scalar_lea.hbm %s1185_s5, 4096 }
  0x53   : > { %p808_p5 = scmp.ne.s32.totalorder %s1126_s7, %s807_s11  ;;  %p812_p9 = scmp.lt.u32.totalorder %s1126_s7, %s1185_s5 }
  0x54   : > { %p813_p12 = scmp.lt.u32.totalorder %s811_s15, %s807_s11  ;;  %p815_p11 = scmp.lt.u32.totalorder %s807_s11, %s1126_s7 }
  0x55   : > { %p809_p6 = pnand %p808_p5, %p951_p4 }
  0x56   : > { %p814_p10 = por %p813_p12, %p812_p9 }
  0x57   : > { %p810_p7 = pneg %p809_p6 }
  0x58   : > { %p816_p13 = por %p815_p11, %p814_p10 }
  0x5a   : > { %p817_p0 = pnand %p816_p13, %p810_p7 }
  0x5c   : > { %820 = shalt.err (!%p817_p0)
}
  0x5d   : > { %s879_s24 = smov 128   ;;  %s880_s27 = smov 8  }
  0x5e   : > { %714 = dma.vmem_to_hbm [thread:$0]  (%p951_p4), %s1128_s25, 2048, %s1126_s7, %s1134_s21, %s879_s24, %s879_s24, %s880_s27  }
  0x5f PF: > { %p726_p1 = scmp.ge.s32.totalorder %s875_s23, 2  ;;  %s515_s29 = sand.u32 1, %s855_s18  }
  0x60   : > { %s516_s9 = scalar_lea.sflag [#allocation3], %s515_s29 }
  0x61   : > { %p721_p2 = pnand %p726_p1, %p958_p8 }
  0x63   : > { %850 = dma.done.wait (!%p721_p2), %s516_s9, 2048  }
  0x64   : > { %852 = vsyncadd (!%p721_p2), %s516_s9, 4294965248  ;;  %s19_s23 = sadd.s32 1, %s875_s23   ;;  %s1190_s18 = smov %s859_s19 }
  0x65   : > { %p16_p3 = scmp.ge.s32.totalorder %s19_s23, 4   ;;  %s1191_s19 = smov %s863_s20 }
  0x66   : > { %s1192_s20 = smov %s964_s6  ;;  %s1193_s21 = smov %s871_s22 }
  0x67   : > { %s1194_s22 = smov %s1196_s26  ;;  %18 = sbr.rel (!%p16_p3) target bundleno = 5 (0x5), region = 83 }
  0x6e   :  { %521 = vsyncpa [#allocation3], 1 }
  0x6f   :  { %523 = vsyncpa [#allocation3 + $0x1], 1 }
  0x70   :  { %524 = vsyncpa [#allocation4], 1 }
  0x71   :  { %526 = vsyncpa [#allocation4 + $0x1], 1 }

// kernel: dual_computation_block.4
= control target key start
LH: loop header
LB: loop body
LE: loop exit
PB: predicated region body
PF: predicated region fallthrough
CT: control target
= control target key end

     0   :  { %17 = vsyncpa [#allocation3], 0  ;;  %s1954_s17 = smov 0   ;;  %s1956_s18 = smov 0   ;;  %s2257_s0 = inlined_call_operand.vmem [shape: bf16[2,128,128], index: 0, kind: input, shape index: {}]   ;;  %s2258_s1 = inlined_call_operand.vmem [shape: f32[2,128,128], index: 1, kind: input, shape index: {}]   ;;  %s2259_s2 = inlined_call_operand.vmem [shape: f32[2,2], index: 2, kind: input, shape index: {}]   ;;  %s2260_s3 = inlined_call_operand.vmem [shape: f32[1,128], index: 3, kind: input, shape index: {}]   ;;  %s2261_s4 = inlined_call_operand.vmem [shape: f32[1,128], index: 4, kind: input, shape index: {}]   ;;  %s2262_s5 = inlined_call_operand.vmem [shape: bf16[128,128], index: 5, kind: input, shape index: {}]   ;;  %s2263_s6 = inlined_call_operand.vmem [shape: f32[1,128], index: 6, kind: input, shape index: {}]   ;;  %s2264_s7 = inlined_call_operand.vmem [shape: bf16[128,128], index: 7, kind: input, shape index: {}]   ;;  %s2265_s8 = inlined_call_operand.vmem [shape: f32[1,128], index: 8, kind: input, shape index: {}]   ;;  %s2266_s9 = inlined_call_operand.vmem [shape: bf16[2,128,128], index: 9, kind: output, shape index: {0}]   ;;  %s2267_s10 = inlined_call_operand.vmem [shape: bf16[2,128,128], index: 10, kind: output, shape index: {1}]   ;;  %s2268_s11 = inlined_call_operand.vmem [shape: f32[2,2,128], index: 11, kind: output, shape index: {2}]  }
   0x1   :  { %s1958_s19 = smov 0  }
   0x2 LB: > { %s1459_s20 = sadd.s32 4294967295, %s1891_s19   ;;  %s35_s21 = sadd.s32 1, %s1887_s18  ;;  %s1891_s19 = sphi %s1958_s19, %s23_s19   ;;  %s1887_s18 = sphi %s1956_s18, %s2272_s18   ;;  %s1883_s17 = sphi %s1954_s17, %s2271_s17  }
   0x3   : > { %p37_p0 = scmp.ge.s32.totalorder %s35_s21, 2  ;;  %p1461_p1 = scmp.ge.s32.totalorder %s1891_s19, 1 }
   0x4   : > { %p325_p2 = scmp.lt.s32.totalorder %s1891_s19, 3  ;;  %p1979_p4 = scmp.eq.s32.totalorder %s1459_s20, 0 }
   0x5   : > { %s2274_s21 = smov (%p37_p0, %s35_s21), 0  ;;  %s338_s26 = sshll.u32 %s2259_s2, 4  ;;  %s339_s26 = int_to_ptr.vmem [resolvable:$true] %s338_s26 }
   0x6   : > { %p1975_p3 = pnand %p1461_p1, %p325_p2  ;;  %s1850_s27 = scalar_lea.vmem %s339_s26, 32 }
   0x7   : > { %p1851_p7 = scmp.ne.s32.totalorder %s339_s26, %s1850_s27  ;;  %p1858_p11 = scmp.lt.s32.totalorder %s339_s26, %s339_s26 }
   0x8   : > { %p1803_p5 = pneg %p1975_p3  ;;  %p1859_p12 = scmp.lt.s32.totalorder %s1850_s27, %s1850_s27 }
   0xa   : > { %p1804_p6 = pnand %p1979_p4, %p1803_p5  ;;  %p1860_p13 = por %p1859_p12, %p1858_p11 }
   0xc   : > { %p1852_p8 = pneg %p1804_p6 }
   0xe   : > { %p1853_p9 = pnand %p1852_p8, %p1851_p7 }
  0x10   : > { %p1854_p10 = pneg %p1853_p9 }
  0x12   : > { %p1861_p0 = pnand %p1860_p13, %p1854_p10 }
  0x14   : > { %1864 = shalt.err (!%p1861_p0)
}
  0x15   : > { %s1893_s28 = smov [#allocation2]   ;;  %395 = sbr.rel (%p1975_p3) target bundleno = 744 (0x2e8), region = 56 }
  0x16   : > { %1806 = dma.vmem_to_smem (!%p1804_p6), %s339_s26, 32, %s1893_s28, [#allocation3]  }
  0x1c   : > { %1878 = dma.done.wait (%p1979_p4), [#allocation3], 32  }
  0x1d   : > { %1880 = vsyncadd (%p1979_p4), [#allocation3], 4294967264 }
  0x1e   : > { %401 = sfence }
  0x1f   : > { %v1834_v0 = vld [vmem:[%s2262_s5] sm:$0xff]   ;;  %p467_p1 = scmp.lt.s32.totalorder %s1883_s17, 1  ;;  %v1835_v1 = vld [vmem:[%s2262_s5 + $0x8] sm:$0xff]   ;;  %s1475_s14 = sshll.u32 %s1883_s17, 7  ;;  %v1836_v2 = vld [vmem:[%s2262_s5 + $0x10] sm:$0xff]  }
  0x20   : > { %1731 = vmatprep.subr.bf16.mxu0 %v1834_v0  ;;  %s512_s15 = sld [smem:[#allocation2 + %s1475_s14]]  ;;  %s513_s26 = sadd.s32 1, %s1475_s14  ;;  %v1837_v3 = vld [vmem:[%s2262_s5 + $0x18] sm:$0xff]   ;;  %v1838_v17 = vld [vmem:[%s2262_s5 + $0x20] sm:$0xff]   ;;  %v1839_v33 = vld [vmem:[%s2262_s5 + $0x28] sm:$0xff]  }
  0x21   : > { %s2276_s17 = smov (!%p467_p1, %s1883_s17), 1  ;;  %1732 = vmatpush3.bf16.msra.mxu0 %v1834_v0  ;;  %s514_s29 = sld [smem:[#allocation2 + %s513_s26]]  ;;  %v2056_v29 = vld [vmem:[%s2260_s3] ss:$0 sm:$0xff]  ;;  %v1840_v54 = vld [vmem:[%s2262_s5 + $0x30] sm:$0xff]  }
  0x22   : > { %1733 = vmatprep.subr.bf16.mxu0 %v1835_v1  ;;  %s2011_s22 = sshll.u32 %s2276_s17, 6  ;;  %s1531_s30 = sshll.u32 %s2276_s17, 7  ;;  %v2069_v36 = vld [vmem:[%s2261_s4] ss:$0 sm:$0xff] }
  0x23   : > { %s2017_s25 = scalar_lea.vmem %s2257_s0, %s2011_s22  ;;  %s2042_s16 = scalar_lea.vmem %s2258_s1, %s1531_s30  ;;  %v1842_v53 = vld [vmem:[%s2264_s7] sm:$0xff]  }
  0x24   : > { %v1567_v4 = vld [vmem:[%s2017_s25] sm:$0xff]   ;;  %v1678_v8 = vld [vmem:[%s2017_s25 + $0x8] sm:$0xff]   ;;  %v1679_v11 = vld [vmem:[%s2017_s25 + $0x10] sm:$0xff]   ;;  %1763 = vmatprep.subr.bf16.mxu1 %v1842_v53  ;;  %s2115_s24 = scalar_lea.vmem %s2266_s9, %s2011_s22  ;;  %s2221_s12 = scalar_lea.vmem %s2267_s10, %s2011_s22 }
  0x25   : > { %1734 = vmatpush3.bf16.msra.mxu0 %v1835_v1  ;;  %v1568_v5 = vunpack.c.l.bf16 %v1567_v4  ;;  %v1569_v6 = vunpack.c.h.bf16 %v1567_v4  ;;  %v1572_v9 = vunpack.c.l.bf16 %v1678_v8  ;;  %v1573_v10 = vunpack.c.h.bf16 %v1678_v8  ;;  %v1680_v16 = vld [vmem:[%s2017_s25 + $0x18] sm:$0xff]   ;;  %v2037_v22 = vld [vmem:[%s2017_s25 + $0x20] sm:$0xff]   ;;  %v2049_v27 = vld [vmem:[%s2017_s25 + $0x28] sm:$0xff]   ;;  %1764 = vmatpush3.bf16.msra.mxu1 %v1842_v53  ;;  %s1474_s22 = sshll.u32 %s2276_s17, 1 }
  0x26   : > { %1735 = vmatprep.subr.bf16.mxu0 %v1836_v2  ;;  %v2023_v7 = vstv %s512_s15  ;;  %v1576_v14 = vunpack.c.l.bf16 %v1679_v11  ;;  %v1577_v15 = vunpack.c.h.bf16 %v1679_v11  ;;  %v1580_v20 = vunpack.c.l.bf16 %v1680_v16  ;;  %v627_v39 = vld [vmem:[%s2042_s16] sm:$0xff]  ;;  %v628_v40 = vld [vmem:[%s2042_s16 + $0x8] sm:$0xff]  ;;  %v629_v41 = vld [vmem:[%s2042_s16 + $0x10] sm:$0xff] }
  0x27   : > { %v548_v12 = vsub.f32 %v1568_v5, %v2023_v7  ;;  %v549_v13 = vsub.f32 %v1569_v6, %v2023_v7  ;;  %v550_v18 = vsub.f32 %v1572_v9, %v2023_v7  ;;  %v551_v19 = vsub.f32 %v1573_v10, %v2023_v7  ;;  %v630_v42 = vld [vmem:[%s2042_s16 + $0x18] sm:$0xff]  ;;  %v631_v51 = vld [vmem:[%s2042_s16 + $0x20] sm:$0xff]  ;;  %v632_v52 = vld [vmem:[%s2042_s16 + $0x28] sm:$0xff] }
  0x28   : > { %v1581_v21 = vunpack.c.h.bf16 %v1680_v16  ;;  %v552_v23 = vsub.f32 %v1576_v14, %v2023_v7  ;;  %v553_v24 = vsub.f32 %v1577_v15, %v2023_v7  ;;  %v1584_v25 = vunpack.c.l.bf16 %v2037_v22  ;;  %v633_v59 = vld [vmem:[%s2042_s16 + $0x30] sm:$0xff]  ;;  %v634_v0 = vld [vmem:[%s2042_s16 + $0x38] sm:$0xff]  ;;  %v1843_v5 = vld [vmem:[%s2264_s7 + $0x8] sm:$0xff]  }
  0x29   : > { %1736 = vmatpush3.bf16.msra.mxu0 %v1836_v2  ;;  %v1585_v26 = vunpack.c.h.bf16 %v2037_v22  ;;  %v2051_v28 = vstv %s514_s29  ;;  %v554_v30 = vsub.f32 %v1580_v20, %v2023_v7  ;;  %v1588_v32 = vunpack.c.l.bf16 %v2049_v27  ;;  %v1683_v11 = vld [vmem:[%s2017_s25 + $0x30] sm:$0xff]   ;;  %v1684_v16 = vld [vmem:[%s2017_s25 + $0x38] sm:$0xff]   ;;  %1765 = vmatprep.subr.bf16.mxu1 %v1843_v5 }
  0x2a   : > { %1737 = vmatprep.subr.bf16.mxu0 %v1837_v3  ;;  %v555_v31 = vsub.f32 %v1581_v21, %v2023_v7  ;;  %v565_v34 = vmul.f32 %v2051_v28, %v548_v12  ;;  %v566_v35 = vmul.f32 %v2051_v28, %v549_v13  ;;  %v567_v37 = vmul.f32 %v2051_v28, %v550_v18  ;;  %v1841_v21 = vld [vmem:[%s2262_s5 + $0x38] sm:$0xff]  }
  0x2b   : > { %v568_v38 = vmul.f32 %v2051_v28, %v551_v19  ;;  %v569_v43 = vmul.f32 %v2051_v28, %v552_v23  ;;  %v570_v44 = vmul.f32 %v2051_v28, %v553_v24  ;;  %v571_v45 = vmul.f32 %v2051_v28, %v554_v30  ;;  %1766 = vmatpush3.bf16.msra.mxu1 %v1843_v5 }
  0x2c   : > { %v572_v46 = vmul.f32 %v2051_v28, %v555_v31  ;;  %v588_v47 = vmul.f32 %v2056_v29, %v565_v34  ;;  %v589_v48 = vmul.f32 %v2056_v29, %v566_v35  ;;  %v590_v49 = vmul.f32 %v2056_v29, %v567_v37  ;;  %v1844_v34 = vld [vmem:[%s2264_s7 + $0x10] sm:$0xff]  }
  0x2d   : > { %1738 = vmatpush3.bf16.msra.mxu0 %v1837_v3  ;;  %v591_v50 = vmul.f32 %v2056_v29, %v568_v38  ;;  %v592_v55 = vmul.f32 %v2056_v29, %v569_v43  ;;  %v593_v56 = vmul.f32 %v2056_v29, %v570_v44  ;;  %v594_v57 = vmul.f32 %v2056_v29, %v571_v45  ;;  %v636_v43 = vld [vmem:[%s2042_s16 + $0x48] sm:$0xff] }
  0x2e   : > { %1739 = vmatprep.subr.bf16.mxu0 %v1838_v17  ;;  %v595_v58 = vmul.f32 %v2056_v29, %v572_v46  ;;  %v611_v60 = vadd.f32 %v2069_v36, %v588_v47  ;;  %v612_v61 = vadd.f32 %v2069_v36, %v589_v48  ;;  %v613_v62 = vadd.f32 %v2069_v36, %v590_v49  ;;  %v1845_v48 = vld [vmem:[%s2264_s7 + $0x18] sm:$0xff]  }
  0x2f   : > { %v614_v63 = vadd.f32 %v2069_v36, %v591_v50  ;;  %v615_v1 = vadd.f32 %v2069_v36, %v592_v55  ;;  %v616_v2 = vadd.f32 %v2069_v36, %v593_v56  ;;  %v617_v3 = vadd.f32 %v2069_v36, %v594_v57  ;;  %1767 = vmatprep.subr.bf16.mxu1 %v1844_v34 }
  0x30   : > { %v618_v4 = vadd.f32 %v2069_v36, %v595_v58  ;;  %v643_v6 = vadd.f32 %v627_v39, %v611_v60  ;;  %v644_v8 = vadd.f32 %v628_v40, %v612_v61  ;;  %v645_v9 = vadd.f32 %v629_v41, %v613_v62  ;;  %1768 = vmatpush3.bf16.msra.mxu1 %v1844_v34  ;;  %v1846_v62 = vld [vmem:[%s2264_s7 + $0x20] sm:$0xff]  }
  0x31   : > { %1740 = vmatpush3.bf16.msra.mxu0 %v1838_v17  ;;  %v646_v10 = vadd.f32 %v630_v42, %v614_v63  ;;  %v647_v12 = vadd.f32 %v631_v51, %v615_v1  ;;  %v648_v13 = vadd.f32 %v632_v52, %v616_v2  ;;  %v649_v14 = vadd.f32 %v633_v59, %v617_v3  ;;  %v635_v42 = vld [vmem:[%s2042_s16 + $0x40] sm:$0xff]  ;;  %v637_v51 = vld [vmem:[%s2042_s16 + $0x50] sm:$0xff]  ;;  %v638_v59 = vld [vmem:[%s2042_s16 + $0x58] sm:$0xff] }
  0x32   : > { %1741 = vmatprep.subr.bf16.mxu0 %v1839_v33  ;;  %v650_v15 = vadd.f32 %v634_v0, %v618_v4  ;;  %v659_v17 = vpack.c.bf16 %v644_v8, %v643_v6  ;;  %v556_v19 = vsub.f32 %v1584_v25, %v2023_v7  ;;  %v557_v20 = vsub.f32 %v1585_v26, %v2023_v7  ;;  %v639_v1 = vld [vmem:[%s2042_s16 + $0x60] sm:$0xff]  ;;  %v641_v8 = vld [vmem:[%s2042_s16 + $0x70] sm:$0xff] }
  0x33   : > { %v2118_v18 = vpack.c.bf16 %v646_v10, %v645_v9  ;;  %v2129_v23 = vpack.c.bf16 %v648_v13, %v647_v12  ;;  %v1589_v30 = vunpack.c.h.bf16 %v2049_v27  ;;  %v558_v25 = vsub.f32 %v1588_v32, %v2023_v7  ;;  %1769 = vmatprep.subr.bf16.mxu1 %v1845_v48  ;;  %v642_v9 = vld [vmem:[%s2042_s16 + $0x78] sm:$0xff] }
  0x34   : > { %v2131_v24 = vpack.c.bf16 %v650_v15, %v649_v14  ;;  %1602 = vst [vmem:[%s2115_s24] sm:$0xff] %v659_v17   ;;  %1747 = vmatprep.mubr.bf16.mxu0 %v659_v17  ;;  %v573_v22 = vmul.f32 %v2051_v28, %v556_v19  ;;  %v574_v26 = vmul.f32 %v2051_v28, %v557_v20  ;;  %v1592_v31 = vunpack.c.l.bf16 %v1683_v11  ;;  %v1847_v14 = vld [vmem:[%s2264_s7 + $0x28] sm:$0xff]   ;;  %v1849_v20 = vld [vmem:[%s2264_s7 + $0x38] sm:$0xff]  }
  0x35   : > { %1742 = vmatpush3.bf16.msra.mxu0 %v1839_v33  ;;  %1685 = vst [vmem:[%s2115_s24 + $0x8] sm:$0xff] %v2118_v18   ;;  %v1593_v33 = vunpack.c.h.bf16 %v1683_v11  ;;  %1686 = vst [vmem:[%s2115_s24 + $0x10] sm:$0xff] %v2129_v23   ;;  %v559_v27 = vsub.f32 %v1589_v30, %v2023_v7  ;;  %v575_v32 = vmul.f32 %v2051_v28, %v558_v25  ;;  %v1596_v35 = vunpack.c.l.bf16 %v1684_v16 }
  0x36   : > { %1743 = vmatprep.subr.bf16.mxu0 %v1840_v54  ;;  %1687 = vst [vmem:[%s2115_s24 + $0x18] sm:$0xff] %v2131_v24   ;;  %v1597_v37 = vunpack.c.h.bf16 %v1684_v16  ;;  %v596_v38 = vmul.f32 %v2056_v29, %v573_v22  ;;  %v597_v39 = vmul.f32 %v2056_v29, %v574_v26  ;;  %v560_v40 = vsub.f32 %v1592_v31, %v2023_v7 }
  0x37   : > { %v561_v41 = vsub.f32 %v1593_v33, %v2023_v7  ;;  %v576_v44 = vmul.f32 %v2051_v28, %v559_v27  ;;  %v598_v45 = vmul.f32 %v2056_v29, %v575_v32  ;;  %v562_v46 = vsub.f32 %v1596_v35, %v2023_v7  ;;  %1770 = vmatpush3.bf16.msra.mxu1 %v1845_v48 }
  0x38   : > { %v563_v47 = vsub.f32 %v1597_v37, %v2023_v7  ;;  %v619_v49 = vadd.f32 %v2069_v36, %v596_v38  ;;  %v620_v50 = vadd.f32 %v2069_v36, %v597_v39  ;;  %v577_v52 = vmul.f32 %v2051_v28, %v560_v40  ;;  %1771 = vmatprep.subr.bf16.mxu1 %v1846_v62 }
  0x39   : > { %1744 = vmatpush3.bf16.msra.mxu0 %v1840_v54  ;;  %v578_v53 = vmul.f32 %v2051_v28, %v561_v41  ;;  %v599_v54 = vmul.f32 %v2056_v29, %v576_v44  ;;  %v621_v7 = vadd.f32 %v2069_v36, %v598_v45  ;;  %v579_v55 = vmul.f32 %v2051_v28, %v562_v46 }
  0x3a   : > { %1745 = vmatprep.subr.bf16.mxu0 %v1841_v21  ;;  %v580_v56 = vmul.f32 %v2051_v28, %v563_v47  ;;  %v651_v57 = vadd.f32 %v635_v42, %v619_v49  ;;  %v652_v58 = vadd.f32 %v636_v43, %v620_v50  ;;  %v600_v60 = vmul.f32 %v2056_v29, %v577_v52  ;;  %v640_v28 = vld [vmem:[%s2042_s16 + $0x68] sm:$0xff]  ;;  %s509_s16 = scalar_lea.vmem %s2268_s11, %s1474_s22 }
  0x3b   : > { %v601_v61 = vmul.f32 %v2056_v29, %v578_v53  ;;  %v622_v63 = vadd.f32 %v2069_v36, %v599_v54  ;;  %v653_v0 = vadd.f32 %v637_v51, %v621_v7  ;;  %v602_v2 = vmul.f32 %v2056_v29, %v579_v55  ;;  %1772 = vmatpush3.bf16.msra.mxu1 %v1846_v62 }
  0x3c   : > { %v603_v3 = vmul.f32 %v2056_v29, %v580_v56  ;;  %v663_v4 = vpack.c.bf16 %v652_v58, %v651_v57  ;;  %v623_v5 = vadd.f32 %v2069_v36, %v600_v60  ;;  %1773 = vmatprep.subr.bf16.mxu1 %v1847_v14 }
  0x3d   : > { %1746 = vmatpush3.bf16.msra.mxu0 %v1841_v21  ;;  %v624_v6 = vadd.f32 %v2069_v36, %v601_v61  ;;  %v654_v10 = vadd.f32 %v638_v59, %v622_v63  ;;  %v625_v11 = vadd.f32 %v2069_v36, %v602_v2  ;;  %v1494_v21 = vld [vmem:[%s2263_s6] ss:$0 sm:$0xff] }
  0x3e   : > { %v626_v12 = vadd.f32 %v2069_v36, %v603_v3  ;;  %1688 = vst [vmem:[%s2115_s24 + $0x20] sm:$0xff] %v663_v4   ;;  %v655_v29 = vadd.f32 %v639_v1, %v623_v5  ;;  %v1848_v36 = vld [vmem:[%s2264_s7 + $0x30] sm:$0xff]  }
  0x3f   : > { %v656_v13 = vadd.f32 %v640_v28, %v624_v6  ;;  %v664_v15 = vpack.c.bf16 %v654_v10, %v653_v0  ;;  %v657_v16 = vadd.f32 %v641_v8, %v625_v11  ;;  %1774 = vmatpush3.bf16.msra.mxu1 %v1847_v14 }
  0x40   : > { %1748 = vmatmul.mubr.bf16.vlgmr.msra.gmra.mrb[0].mxu0 %v2118_v18  ;;  %v658_v17 = vadd.f32 %v642_v9, %v626_v12  ;;  %1775 = vmatprep.subr.bf16.mxu1 %v1848_v36 }
  0x41   : > { %1751 = vmatprep.mubr.bf16.mxu0 %v2129_v23  ;;  %v665_v18 = vpack.c.bf16 %v656_v13, %v655_v29  ;;  %1689 = vst [vmem:[%s2115_s24 + $0x28] sm:$0xff] %v664_v15  }
  0x42   : > { %v666_v19 = vpack.c.bf16 %v658_v17, %v657_v16 }
  0x43   : > { %1690 = vst [vmem:[%s2115_s24 + $0x30] sm:$0xff] %v665_v18   ;;  %1776 = vmatpush3.bf16.msra.mxu1 %v1848_v36 }
  0x44   : > { %1691 = vst [vmem:[%s2115_s24 + $0x38] sm:$0xff] %v666_v19   ;;  %1777 = vmatprep.subr.bf16.mxu1 %v1849_v20 }
  0x47   : > { %1778 = vmatpush3.bf16.msra.mxu1 %v1849_v20 }
  0x48   : > { %1752 = vmatmul.mubr.bf16.gmra.mrb[4].mxu0 %v2131_v24 }
  0x49   : > { %1755 = vmatprep.mubr.bf16.mxu0 %v663_v4 }
  0x50   : > { %1756 = vmatmul.mubr.bf16.gmra.mrb[8].mxu0 %v664_v15  ;;  %v2212_v15 = vld [vmem:[%s2265_s8] ss:$0 sm:$0xff] }
  0x51   : > { %1759 = vmatprep.mubr.bf16.mxu0 %v665_v18 }
  0x58   : > { %1760 = vmatmul.mubr.bf16.gmra.mrb[12].mxu0 %v666_v19 }
 0x113   : > { %v1749_v23 = vpop.f32.mrb[0].mxu0 }
 0x114   : > { %v853_v24 = vadd.f32 %v1749_v23, %v1494_v21  ;;  %v844_v30 = vpop.f32.mrb[1].mxu0 }
 0x115   : > { %v845_v25 = vadd.f32 %v1494_v21, %v844_v30  ;;  %v1750_v22 = vpop.f32.mrb[2].mxu0 }
 0x116   : > { %v856_v26 = vadd.f32 %v1750_v22, %v1494_v21  ;;  %v847_v31 = vpop.f32.mrb[3].mxu0  ;;  %v909_v34 = vmax.f32 %v853_v24, 0.0 }
 0x117   : > { %v848_v33 = vadd.f32 %v1494_v21, %v847_v31  ;;  %v907_v32 = vmax.f32 %v845_v25, 0.0 }
 0x118   : > { %v910_v27 = vmax.f32 %v856_v26, 0.0 }
 0x119   : > { %v908_v35 = vmax.f32 %v848_v33, 0.0 }
 0x11a   : > { %v924_v37 = vpack.c.bf16 %v910_v27, %v909_v34 }
 0x11b   : > { %v1753_v38 = vpop.f32.mrb[4].mxu0  ;;  %v923_v39 = vpack.c.bf16 %v908_v35, %v907_v32 }
 0x11c   : > { %v869_v40 = vadd.f32 %v1753_v38, %v1494_v21  ;;  %v860_v41 = vpop.f32.mrb[5].mxu0 }
 0x11d   : > { %v861_v42 = vadd.f32 %v1494_v21, %v860_v41  ;;  %v1754_v43 = vpop.f32.mrb[6].mxu0  ;;  %1779 = vmatprep.mubr.bf16.mxu1 %v923_v39 }
 0x11e   : > { %v872_v44 = vadd.f32 %v1754_v43, %v1494_v21  ;;  %v863_v45 = vpop.f32.mrb[7].mxu0  ;;  %1780 = vmatmul.mubr.bf16.vlgmr.msra.gmra.mrb[0].mxu1 %v924_v37  ;;  %v913_v47 = vmax.f32 %v869_v40, 0.0 }
 0x11f   : > { %v864_v46 = vadd.f32 %v1494_v21, %v863_v45  ;;  %v911_v49 = vmax.f32 %v861_v42, 0.0 }
 0x120   : > { %v914_v48 = vmax.f32 %v872_v44, 0.0 }
 0x121   : > { %v912_v50 = vmax.f32 %v864_v46, 0.0 }
 0x122   : > { %v926_v51 = vpack.c.bf16 %v914_v48, %v913_v47 }
 0x123   : > { %v925_v52 = vpack.c.bf16 %v912_v50, %v911_v49  ;;  %v1757_v53 = vpop.f32.mrb[8].mxu0 }
 0x124   : > { %v885_v54 = vadd.f32 %v1757_v53, %v1494_v21  ;;  %v876_v7 = vpop.f32.mrb[9].mxu0 }
 0x125   : > { %v877_v55 = vadd.f32 %v1494_v21, %v876_v7  ;;  %v1758_v56 = vpop.f32.mrb[10].mxu0  ;;  %1783 = vmatprep.mubr.bf16.mxu1 %v925_v52 }
 0x126   : > { %v888_v57 = vadd.f32 %v1758_v56, %v1494_v21  ;;  %v879_v58 = vpop.f32.mrb[11].mxu0  ;;  %1784 = vmatmul.mubr.bf16.gmra.mrb[4].mxu1 %v926_v51  ;;  %v917_v60 = vmax.f32 %v885_v54, 0.0 }
 0x127   : > { %v880_v59 = vadd.f32 %v1494_v21, %v879_v58  ;;  %v915_v62 = vmax.f32 %v877_v55, 0.0 }
 0x128   : > { %v918_v61 = vmax.f32 %v888_v57, 0.0 }
 0x129   : > { %v916_v63 = vmax.f32 %v880_v59, 0.0 }
 0x12a   : > { %v928_v0 = vpack.c.bf16 %v918_v61, %v917_v60 }
 0x12b   : > { %v927_v1 = vpack.c.bf16 %v916_v63, %v915_v62  ;;  %v1761_v28 = vpop.f32.mrb[12].mxu0 }
 0x12c   : > { %v901_v2 = vadd.f32 %v1761_v28, %v1494_v21  ;;  %v892_v3 = vpop.f32.mrb[13].mxu0 }
 0x12d   : > { %v893_v4 = vadd.f32 %v1494_v21, %v892_v3  ;;  %v1762_v5 = vpop.f32.mrb[14].mxu0  ;;  %1787 = vmatprep.mubr.bf16.mxu1 %v927_v1 }
 0x12e   : > { %v904_v6 = vadd.f32 %v1762_v5, %v1494_v21  ;;  %v895_v8 = vpop.f32.mrb[15].mxu0  ;;  %1788 = vmatmul.mubr.bf16.gmra.mrb[8].mxu1 %v928_v0  ;;  %v921_v10 = vmax.f32 %v901_v2, 0.0 }
 0x12f   : > { %v896_v9 = vadd.f32 %v1494_v21, %v895_v8  ;;  %v919_v12 = vmax.f32 %v893_v4, 0.0 }
 0x130   : > { %v922_v11 = vmax.f32 %v904_v6, 0.0 }
 0x131   : > { %v920_v29 = vmax.f32 %v896_v9, 0.0 }
 0x132   : > { %v930_v13 = vpack.c.bf16 %v922_v11, %v921_v10 }
 0x133   : > { %v929_v14 = vpack.c.bf16 %v920_v29, %v919_v12 }
 0x135   : > { %1791 = vmatprep.mubr.bf16.mxu1 %v929_v14 }
 0x136   : > { %1792 = vmatmul.mubr.bf16.gmra.mrb[12].mxu1 %v930_v13 }
 0x1f1   : > { %v1781_v16 = vpop.f32.mrb[0].mxu1 }
 0x1f2   : > { %v1036_v17 = vpop.f32.mrb[1].mxu1  ;;  %v1045_v36 = vadd.f32 %v1781_v16, %v2212_v15 }
 0x1f3   : > { %v1037_v18 = vadd.f32 %v2212_v15, %v1036_v17  ;;  %v1782_v19 = vpop.f32.mrb[2].mxu1 }
 0x1f4   : > { %v1048_v20 = vadd.f32 %v1782_v19, %v2212_v15  ;;  %v1039_v21 = vpop.f32.mrb[3].mxu1  ;;  %v1205_v31 = vmul.f32 %v1045_v36, %v1045_v36 }
 0x1f5   : > { %v1040_v23 = vadd.f32 %v2212_v15, %v1039_v21  ;;  %v1203_v30 = vmul.f32 %v1037_v18, %v1037_v18 }
 0x1f6   : > { %v1646_v24 = vpack.c.bf16 %v1048_v20, %v1045_v36  ;;  %v1206_v35 = vmul.f32 %v1048_v20, %v1048_v20 }
 0x1f7   : > { %v1641_v25 = vpack.c.bf16 %v1040_v23, %v1037_v18  ;;  %v1179_v22 = vadd.f32 %v1040_v23, %v1037_v18  ;;  %v1204_v26 = vmul.f32 %v1040_v23, %v1040_v23 }
 0x1f8   : > { %1692 = vst [vmem:[%s2221_s12 + $0x8] sm:$0xff] %v1646_v24  }
 0x1f9   : > { %1642 = vst [vmem:[%s2221_s12] sm:$0xff] %v1641_v25   ;;  %v1180_v33 = vadd.f32 %v1179_v22, %v1045_v36  ;;  %v1219_v34 = vadd.f32 %v1204_v26, %v1203_v30  ;;  %v1785_v27 = vpop.f32.mrb[4].mxu1 }
 0x1fa   : > { %v1052_v32 = vpop.f32.mrb[5].mxu1  ;;  %v1061_v41 = vadd.f32 %v1785_v27, %v2212_v15 }
 0x1fb   : > { %v1220_v37 = vadd.f32 %v1219_v34, %v1205_v31  ;;  %v1053_v38 = vadd.f32 %v2212_v15, %v1052_v32  ;;  %v1181_v39 = vadd.f32 %v1180_v33, %v1048_v20  ;;  %v1786_v40 = vpop.f32.mrb[6].mxu1 }
 0x1fc   : > { %v1064_v42 = vadd.f32 %v1786_v40, %v2212_v15  ;;  %v1055_v43 = vpop.f32.mrb[7].mxu1  ;;  %v1209_v53 = vmul.f32 %v1061_v41, %v1061_v41 }
 0x1fd   : > { %v1182_v44 = vadd.f32 %v1181_v39, %v1053_v38  ;;  %v1207_v45 = vmul.f32 %v1053_v38, %v1053_v38  ;;  %v1221_v46 = vadd.f32 %v1220_v37, %v1206_v35  ;;  %v1056_v47 = vadd.f32 %v2212_v15, %v1055_v43 }
 0x1fe   : > { %v1656_v48 = vpack.c.bf16 %v1064_v42, %v1061_v41  ;;  %v1210_v57 = vmul.f32 %v1064_v42, %v1064_v42 }
 0x1ff   : > { %v1222_v49 = vadd.f32 %v1221_v46, %v1207_v45  ;;  %v1651_v50 = vpack.c.bf16 %v1056_v47, %v1053_v38  ;;  %v1183_v51 = vadd.f32 %v1182_v44, %v1056_v47  ;;  %v1208_v52 = vmul.f32 %v1056_v47, %v1056_v47 }
 0x200   : > { %1694 = vst [vmem:[%s2221_s12 + $0x18] sm:$0xff] %v1656_v48  }
 0x201   : > { %1693 = vst [vmem:[%s2221_s12 + $0x10] sm:$0xff] %v1651_v50   ;;  %v1184_v54 = vadd.f32 %v1183_v51, %v1061_v41  ;;  %v1223_v7 = vadd.f32 %v1222_v49, %v1208_v52  ;;  %v1789_v55 = vpop.f32.mrb[8].mxu1 }
 0x202   : > { %v1068_v56 = vpop.f32.mrb[9].mxu1  ;;  %v1077_v62 = vadd.f32 %v1789_v55, %v2212_v15 }
 0x203   : > { %v1224_v58 = vadd.f32 %v1223_v7, %v1209_v53  ;;  %v1069_v59 = vadd.f32 %v2212_v15, %v1068_v56  ;;  %v1185_v60 = vadd.f32 %v1184_v54, %v1064_v42  ;;  %v1790_v61 = vpop.f32.mrb[10].mxu1  ;;  %v1243_v54 = vlaneseq }
 0x204   : > { %v1080_v63 = vadd.f32 %v1790_v61, %v2212_v15  ;;  %v1071_v0 = vpop.f32.mrb[11].mxu1  ;;  %v1213_v10 = vmul.f32 %v1077_v62, %v1077_v62 }
 0x205   : > { %v1186_v1 = vadd.f32 %v1185_v60, %v1069_v59  ;;  %v1211_v28 = vmul.f32 %v1069_v59, %v1069_v59  ;;  %v1225_v2 = vadd.f32 %v1224_v58, %v1210_v57  ;;  %v1072_v3 = vadd.f32 %v2212_v15, %v1071_v0 }
 0x206   : > { %v1666_v4 = vpack.c.bf16 %v1080_v63, %v1077_v62  ;;  %v1214_v14 = vmul.f32 %v1080_v63, %v1080_v63  ;;  %v1244_v7 = vshrl.u32 %v1243_v54, 7 }
 0x207   : > { %v1226_v5 = vadd.f32 %v1225_v2, %v1211_v28  ;;  %v1661_v6 = vpack.c.bf16 %v1072_v3, %v1069_v59  ;;  %v1187_v8 = vadd.f32 %v1186_v1, %v1072_v3  ;;  %v1212_v9 = vmul.f32 %v1072_v3, %v1072_v3 }
 0x208   : > { %1696 = vst [vmem:[%s2221_s12 + $0x28] sm:$0xff] %v1666_v4   ;;  %vm1245_vm0 = vcmp.eq.s32.totalorder %v1244_v7, 0 }
 0x209   : > { %1695 = vst [vmem:[%s2221_s12 + $0x20] sm:$0xff] %v1661_v6   ;;  %v1188_v11 = vadd.f32 %v1187_v8, %v1077_v62  ;;  %v1227_v12 = vadd.f32 %v1226_v5, %v1212_v9  ;;  %v1793_v29 = vpop.f32.mrb[12].mxu1 }
 0x20a   : > { %v1084_v13 = vpop.f32.mrb[13].mxu1  ;;  %v1093_v36 = vadd.f32 %v1793_v29, %v2212_v15 }
 0x20b   : > { %v1228_v16 = vadd.f32 %v1227_v12, %v1213_v10  ;;  %v1085_v17 = vadd.f32 %v2212_v15, %v1084_v13  ;;  %v1189_v18 = vadd.f32 %v1188_v11, %v1080_v63  ;;  %v1794_v19 = vpop.f32.mrb[14].mxu1 }
 0x20c   : > { %v1096_v20 = vadd.f32 %v1794_v19, %v2212_v15  ;;  %v1087_v21 = vpop.f32.mrb[15].mxu1  ;;  %v1217_v27 = vmul.f32 %v1093_v36, %v1093_v36 }
 0x20d   : > { %v1190_v23 = vadd.f32 %v1189_v18, %v1085_v17  ;;  %v1215_v24 = vmul.f32 %v1085_v17, %v1085_v17  ;;  %v1229_v30 = vadd.f32 %v1228_v16, %v1214_v14  ;;  %v1088_v25 = vadd.f32 %v2212_v15, %v1087_v21 }
 0x20e   : > { %v1676_v22 = vpack.c.bf16 %v1096_v20, %v1093_v36  ;;  %v1218_v38 = vmul.f32 %v1096_v20, %v1096_v20 }
 0x20f   : > { %v1230_v26 = vadd.f32 %v1229_v30, %v1215_v24  ;;  %v1671_v31 = vpack.c.bf16 %v1088_v25, %v1085_v17  ;;  %v1216_v33 = vmul.f32 %v1088_v25, %v1088_v25  ;;  %v1191_v34 = vadd.f32 %v1190_v23, %v1088_v25 }
 0x210   : > { %1698 = vst [vmem:[%s2221_s12 + $0x38] sm:$0xff] %v1676_v22  }
 0x211   : > { %1697 = vst [vmem:[%s2221_s12 + $0x30] sm:$0xff] %v1671_v31   ;;  %v1192_v32 = vadd.f32 %v1191_v34, %v1093_v36  ;;  %v1231_v35 = vadd.f32 %v1230_v26, %v1216_v33 }
 0x213   : > { %v1193_v37 = vadd.f32 %v1192_v32, %v1096_v20  ;;  %v1232_v39 = vadd.f32 %v1231_v35, %v1217_v27 }
 0x215   : > { %1194 = vadd.xlane.f32.xlu0 %v1193_v37  ;;  %v1233_v40 = vadd.f32 %v1232_v39, %v1218_v38 }
 0x219   : > { %1234 = vadd.xlane.f32.xlu0 %v1233_v40 }
 0x2a2   : > { %v1195_v41 = vpop.xlane.xlu0 %1194 }
 0x2a3   : > { %v1196_v42 = vrot.slane %v1195_v41, 4 }
 0x2a5   : > { %v1197_v43 = vadd.f32 %v1196_v42, %v1195_v41 }
 0x2a6   : > { %v1235_v15 = vpop.xlane.xlu0 %1234 }
 0x2a7   : > { %v1198_v44 = vrot.slane %v1197_v43, 2  ;;  %v1236_v45 = vrot.slane %v1235_v15, 4 }
 0x2a9   : > { %v1237_v46 = vadd.f32 %v1236_v45, %v1235_v15  ;;  %v1199_v47 = vadd.f32 %v1198_v44, %v1197_v43 }
 0x2ab   : > { %v1238_v48 = vrot.slane %v1237_v46, 2  ;;  %v1200_v49 = vrot.slane %v1199_v47, 1 }
 0x2ad   : > { %v1239_v50 = vadd.f32 %v1238_v48, %v1237_v46  ;;  %v1201_v51 = vadd.f32 %v1200_v49, %v1199_v47 }
 0x2af   : > { %1795 = vpush %v1201_v51  ;;  %v1240_v52 = vrot.slane %v1239_v50, 1 }
 0x2b1   : > { %v1241_v53 = vadd.f32 %v1240_v52, %v1239_v50 }
 0x2b3   : > { %1797 = vpush %v1241_v53 }
 0x2e0   : > { %s1796_s13 = spop %1795 }
 0x2e1   : > { %v1246_v55 = vstv %s1796_s13 }
 0x2e4   : > { %s1798_s20 = spop %1797 }
 0x2e5   : > { %v1247_v56 = vstv %s1798_s20 }
 0x2e6   : > { %v1248_v57 = vsel %vm1245_vm0, %v1246_v55, %v1247_v56 }
 0x2e7   : > { %1253 = vst [vmem:[%s509_s16] sm:$0x3] %v1248_v57 }
 0x2e8 PF: > { %s23_s19 = sadd.s32 1, %s1891_s19   ;;  %s2271_s17 = smov %s1887_s18 }
 0x2e9   : > { %p20_p2 = scmp.ge.s32.totalorder %s23_s19, 4   ;;  %s2272_s18 = smov %s2274_s21 }
 0x2eb   :  { %22 = sbr.rel (!%p20_p2) target bundleno = 2 (0x2), region = 126 }
 0x2f2   :  { %1330 = vsyncpa [#allocation3], 1 }
 0x2f3   :  { %1332 = vsyncpa [#allocation3 + $0x1], 1 }

// kernel: dual_computation_block.3
= control target key start
LH: loop header
LB: loop body
LE: loop exit
PB: predicated region body
PF: predicated region fallthrough
CT: control target
= control target key end

     0   :  { %s1277_s21 = smov 0   ;;  %s1279_s22 = smov 0   ;;  %s1418_s0 = inlined_call_operand.vmem [shape: f32[2,128,128], index: 0, kind: input, shape index: {}]   ;;  %s1419_s1 = inlined_call_operand.vmem [shape: bf16[128,128], index: 1, kind: input, shape index: {}]   ;;  %s1420_s2 = inlined_call_operand.vmem [shape: f32[1,128], index: 2, kind: input, shape index: {}]   ;;  %s1421_s3 = inlined_call_operand.vmem [shape: bf16[128,128], index: 3, kind: input, shape index: {}]   ;;  %s1422_s4 = inlined_call_operand.vmem [shape: f32[1,128], index: 4, kind: input, shape index: {}]   ;;  %s1423_s5 = inlined_call_operand.vmem [shape: bf16[2,128,128], index: 5, kind: output, shape index: {0}]   ;;  %s1424_s6 = inlined_call_operand.vmem [shape: f32[2,2,128], index: 6, kind: output, shape index: {1}]  }
   0x1   :  { %s1281_s23 = smov 0  }
   0x2 LB: > { %s29_s24 = sadd.s32 1, %s1236_s22  ;;  %p971_p0 = scmp.ge.s32.totalorder %s1240_s23, 1  ;;  %s1240_s23 = sphi %s1281_s23, %s17_s23   ;;  %s1236_s22 = sphi %s1279_s22, %s1426_s22   ;;  %s1232_s21 = sphi %s1277_s21, %s1425_s21  }
   0x3   : > { %p31_p1 = scmp.ge.s32.totalorder %s29_s24, 2  ;;  %p236_p2 = scmp.lt.s32.totalorder %s1240_s23, 3 }
   0x5   : > { %s1428_s24 = smov (%p31_p1, %s29_s24), 0  ;;  %p237_p3 = pnand %p971_p0, %p236_p2 }
   0x6   : > { %v1202_v0 = vld [vmem:[%s1419_s1] sm:$0xff] (!%p237_p3)   ;;  %p279_p4 = scmp.lt.s32.totalorder (!%p237_p3), %s1232_s21, 1  ;;  %v1203_v1 = vld [vmem:[%s1419_s1 + $0x8] sm:$0xff] (!%p237_p3)   ;;  %v1204_v2 = vld [vmem:[%s1419_s1 + $0x10] sm:$0xff] (!%p237_p3)  }
   0x7   : > { %240 = sbr.rel (%p237_p3) target bundleno = 719 (0x2cf), region = 40  ;;  %1110 = vmatprep.subr.bf16.mxu0 (!%p237_p3), %v1202_v0  ;;  %v1205_v3 = vld [vmem:[%s1419_s1 + $0x18] sm:$0xff] (!%p237_p3)   ;;  %v1206_v7 = vld [vmem:[%s1419_s1 + $0x20] sm:$0xff] (!%p237_p3)   ;;  %v1211_v9 = vld [vmem:[%s1421_s3 + $0x8] sm:$0xff] (!%p237_p3)  }
   0x8   : > { %1111 = vmatpush3.bf16.msra.mxu0 (!%p237_p3), %v1202_v0  ;;  %v1210_v8 = vld [vmem:[%s1421_s3] sm:$0xff] (!%p237_p3)   ;;  %v1207_v10 = vld [vmem:[%s1419_s1 + $0x28] sm:$0xff] (!%p237_p3)   ;;  %v1212_v11 = vld [vmem:[%s1421_s3 + $0x10] sm:$0xff] (!%p237_p3)  }
   0x9   : > { %1112 = vmatprep.subr.bf16.mxu0 (!%p237_p3), %v1203_v1  ;;  %1142 = vmatprep.subr.bf16.mxu1 (!%p237_p3), %v1210_v8  ;;  %v1208_v12 = vld [vmem:[%s1419_s1 + $0x30] sm:$0xff] (!%p237_p3)   ;;  %v1213_v13 = vld [vmem:[%s1421_s3 + $0x18] sm:$0xff] (!%p237_p3)   ;;  %v1214_v15 = vld [vmem:[%s1421_s3 + $0x20] sm:$0xff] (!%p237_p3)  }
   0xa   : > { %1143 = vmatpush3.bf16.msra.mxu1 (!%p237_p3), %v1210_v8  ;;  %v1209_v14 = vld [vmem:[%s1419_s1 + $0x38] sm:$0xff] (!%p237_p3)   ;;  %v1215_v21 = vld [vmem:[%s1421_s3 + $0x28] sm:$0xff] (!%p237_p3)   ;;  %v1216_v38 = vld [vmem:[%s1421_s3 + $0x30] sm:$0xff] (!%p237_p3)  }
   0xb   : > { %1144 = vmatprep.subr.bf16.mxu1 (!%p237_p3), %v1211_v9  ;;  %v1217_v39 = vld [vmem:[%s1421_s3 + $0x38] sm:$0xff] (!%p237_p3)   ;;  %v977_v40 = vld [vmem:[%s1420_s2] ss:$0 sm:$0xff] (!%p237_p3) }
   0xc   : > { %1113 = vmatpush3.bf16.msra.mxu0 (!%p237_p3), %v1203_v1 }
   0xd   : > { %1114 = vmatprep.subr.bf16.mxu0 (!%p237_p3), %v1204_v2 }
   0xe   : > { %s1430_s21 = smov (!%p279_p4, %s1232_s21), 1  ;;  %1145 = vmatpush3.bf16.msra.mxu1 %v1211_v9 }
   0xf   : > { %s1013_s7 = sshll.u32 %s1430_s21, 7  ;;  %1146 = vmatprep.subr.bf16.mxu1 %v1212_v11  ;;  %s1014_s25 = sshll.u32 %s1430_s21, 6 }
  0x10   : > { %s1310_s10 = scalar_lea.vmem %s1418_s0, %s1013_s7  ;;  %1115 = vmatpush3.bf16.msra.mxu0 %v1204_v2  ;;  %s1382_s28 = scalar_lea.vmem %s1423_s5, %s1014_s25 }
  0x11   : > { %v303_v4 = vld [vmem:[%s1310_s10] sm:$0xff]  ;;  %v304_v5 = vld [vmem:[%s1310_s10 + $0x8] sm:$0xff]  ;;  %1116 = vmatprep.subr.bf16.mxu0 %v1205_v3  ;;  %v305_v16 = vld [vmem:[%s1310_s10 + $0x10] sm:$0xff]  ;;  %s976_s29 = sshll.u32 %s1430_s21, 1 }
  0x12   : > { %v319_v6 = vpack.c.bf16 %v304_v5, %v303_v4  ;;  %1147 = vmatpush3.bf16.msra.mxu1 %v1212_v11  ;;  %v306_v17 = vld [vmem:[%s1310_s10 + $0x18] sm:$0xff]  ;;  %v307_v18 = vld [vmem:[%s1310_s10 + $0x20] sm:$0xff]  ;;  %v308_v19 = vld [vmem:[%s1310_s10 + $0x28] sm:$0xff]  ;;  %s301_s9 = scalar_lea.vmem %s1424_s6, %s976_s29 }
  0x13   : > { %1148 = vmatprep.subr.bf16.mxu1 %v1213_v13  ;;  %v320_v20 = vpack.c.bf16 %v306_v17, %v305_v16  ;;  %v321_v22 = vpack.c.bf16 %v308_v19, %v307_v18  ;;  %v309_v23 = vld [vmem:[%s1310_s10 + $0x30] sm:$0xff]  ;;  %v310_v24 = vld [vmem:[%s1310_s10 + $0x38] sm:$0xff]  ;;  %v311_v25 = vld [vmem:[%s1310_s10 + $0x40] sm:$0xff] }
  0x14   : > { %1126 = vmatprep.mubr.bf16.mxu0 %v319_v6  ;;  %1117 = vmatpush3.bf16.msra.mxu0 %v1205_v3  ;;  %v312_v26 = vld [vmem:[%s1310_s10 + $0x48] sm:$0xff]  ;;  %v322_v27 = vpack.c.bf16 %v310_v24, %v309_v23  ;;  %v313_v29 = vld [vmem:[%s1310_s10 + $0x50] sm:$0xff]  ;;  %v314_v30 = vld [vmem:[%s1310_s10 + $0x58] sm:$0xff] }
  0x15   : > { %1118 = vmatprep.subr.bf16.mxu0 %v1206_v7  ;;  %v323_v28 = vpack.c.bf16 %v312_v26, %v311_v25  ;;  %v315_v31 = vld [vmem:[%s1310_s10 + $0x60] sm:$0xff]  ;;  %v316_v32 = vld [vmem:[%s1310_s10 + $0x68] sm:$0xff]  ;;  %v324_v33 = vpack.c.bf16 %v314_v30, %v313_v29  ;;  %v317_v35 = vld [vmem:[%s1310_s10 + $0x70] sm:$0xff] }
  0x16   : > { %1149 = vmatpush3.bf16.msra.mxu1 %v1213_v13  ;;  %v325_v34 = vpack.c.bf16 %v316_v32, %v315_v31  ;;  %v318_v36 = vld [vmem:[%s1310_s10 + $0x78] sm:$0xff] }
  0x17   : > { %1150 = vmatprep.subr.bf16.mxu1 %v1214_v15  ;;  %v326_v37 = vpack.c.bf16 %v318_v36, %v317_v35 }
  0x18   : > { %1119 = vmatpush3.bf16.msra.mxu0 %v1206_v7 }
  0x19   : > { %1120 = vmatprep.subr.bf16.mxu0 %v1207_v10 }
  0x1a   : > { %1151 = vmatpush3.bf16.msra.mxu1 %v1214_v15 }
  0x1b   : > { %1152 = vmatprep.subr.bf16.mxu1 %v1215_v21 }
  0x1c   : > { %1121 = vmatpush3.bf16.msra.mxu0 %v1207_v10 }
  0x1d   : > { %1122 = vmatprep.subr.bf16.mxu0 %v1208_v12 }
  0x1e   : > { %1153 = vmatpush3.bf16.msra.mxu1 %v1215_v21 }
  0x1f   : > { %1154 = vmatprep.subr.bf16.mxu1 %v1216_v38 }
  0x20   : > { %1123 = vmatpush3.bf16.msra.mxu0 %v1208_v12 }
  0x21   : > { %1124 = vmatprep.subr.bf16.mxu0 %v1209_v14 }
  0x22   : > { %1155 = vmatpush3.bf16.msra.mxu1 %v1216_v38 }
  0x23   : > { %1156 = vmatprep.subr.bf16.mxu1 %v1217_v39 }
  0x24   : > { %1125 = vmatpush3.bf16.msra.mxu0 %v1209_v14 }
  0x26   : > { %1157 = vmatpush3.bf16.msra.mxu1 %v1217_v39 }
  0x27   : > { %1127 = vmatmul.mubr.bf16.vlgmr.msra.gmra.mrb[0].mxu0 %v320_v20 }
  0x28   : > { %1130 = vmatprep.mubr.bf16.mxu0 %v321_v22 }
  0x2f   : > { %1131 = vmatmul.mubr.bf16.gmra.mrb[4].mxu0 %v322_v27 }
  0x30   : > { %1134 = vmatprep.mubr.bf16.mxu0 %v323_v28 }
  0x37   : > { %1135 = vmatmul.mubr.bf16.gmra.mrb[8].mxu0 %v324_v33  ;;  %v1373_v33 = vld [vmem:[%s1422_s4] ss:$0 sm:$0xff] }
  0x38   : > { %1138 = vmatprep.mubr.bf16.mxu0 %v325_v34 }
  0x3f   : > { %1139 = vmatmul.mubr.bf16.gmra.mrb[12].mxu0 %v326_v37 }
  0xfa   : > { %v1128_v41 = vpop.f32.mrb[0].mxu0 }
  0xfb   : > { %v441_v42 = vadd.f32 %v1128_v41, %v977_v40  ;;  %v432_v43 = vpop.f32.mrb[1].mxu0 }
  0xfc   : > { %v433_v44 = vadd.f32 %v977_v40, %v432_v43  ;;  %v1129_v45 = vpop.f32.mrb[2].mxu0 }
  0xfd   : > { %v444_v46 = vadd.f32 %v1129_v45, %v977_v40  ;;  %v435_v47 = vpop.f32.mrb[3].mxu0  ;;  %v497_v49 = vmax.f32 %v441_v42, 0.0 }
  0xfe   : > { %v436_v48 = vadd.f32 %v977_v40, %v435_v47  ;;  %v495_v51 = vmax.f32 %v433_v44, 0.0 }
  0xff   : > { %v498_v50 = vmax.f32 %v444_v46, 0.0 }
 0x100   : > { %v496_v52 = vmax.f32 %v436_v48, 0.0 }
 0x101   : > { %v512_v53 = vpack.c.bf16 %v498_v50, %v497_v49 }
 0x102   : > { %v1132_v54 = vpop.f32.mrb[4].mxu0  ;;  %v511_v55 = vpack.c.bf16 %v496_v52, %v495_v51 }
 0x103   : > { %v457_v56 = vadd.f32 %v1132_v54, %v977_v40  ;;  %v448_v57 = vpop.f32.mrb[5].mxu0 }
 0x104   : > { %v449_v58 = vadd.f32 %v977_v40, %v448_v57  ;;  %v1133_v59 = vpop.f32.mrb[6].mxu0  ;;  %1158 = vmatprep.mubr.bf16.mxu1 %v511_v55 }
 0x105   : > { %v460_v60 = vadd.f32 %v1133_v59, %v977_v40  ;;  %v451_v61 = vpop.f32.mrb[7].mxu0  ;;  %1159 = vmatmul.mubr.bf16.vlgmr.msra.gmra.mrb[0].mxu1 %v512_v53  ;;  %v501_v63 = vmax.f32 %v457_v56, 0.0 }
 0x106   : > { %v452_v62 = vadd.f32 %v977_v40, %v451_v61  ;;  %v499_v1 = vmax.f32 %v449_v58, 0.0 }
 0x107   : > { %v502_v0 = vmax.f32 %v460_v60, 0.0 }
 0x108   : > { %v500_v2 = vmax.f32 %v452_v62, 0.0 }
 0x109   : > { %v514_v3 = vpack.c.bf16 %v502_v0, %v501_v63 }
 0x10a   : > { %v513_v4 = vpack.c.bf16 %v500_v2, %v499_v1  ;;  %v1136_v5 = vpop.f32.mrb[8].mxu0 }
 0x10b   : > { %v473_v6 = vadd.f32 %v1136_v5, %v977_v40  ;;  %v464_v7 = vpop.f32.mrb[9].mxu0 }
 0x10c   : > { %v465_v8 = vadd.f32 %v977_v40, %v464_v7  ;;  %v1137_v9 = vpop.f32.mrb[10].mxu0  ;;  %1162 = vmatprep.mubr.bf16.mxu1 %v513_v4 }
 0x10d   : > { %v476_v10 = vadd.f32 %v1137_v9, %v977_v40  ;;  %v467_v11 = vpop.f32.mrb[11].mxu0  ;;  %1163 = vmatmul.mubr.bf16.gmra.mrb[4].mxu1 %v514_v3  ;;  %v505_v13 = vmax.f32 %v473_v6, 0.0 }
 0x10e   : > { %v468_v12 = vadd.f32 %v977_v40, %v467_v11  ;;  %v503_v15 = vmax.f32 %v465_v8, 0.0 }
 0x10f   : > { %v506_v14 = vmax.f32 %v476_v10, 0.0 }
 0x110   : > { %v504_v16 = vmax.f32 %v468_v12, 0.0 }
 0x111   : > { %v516_v17 = vpack.c.bf16 %v506_v14, %v505_v13 }
 0x112   : > { %v515_v18 = vpack.c.bf16 %v504_v16, %v503_v15  ;;  %v1140_v19 = vpop.f32.mrb[12].mxu0 }
 0x113   : > { %v489_v20 = vadd.f32 %v1140_v19, %v977_v40  ;;  %v480_v21 = vpop.f32.mrb[13].mxu0 }
 0x114   : > { %v481_v22 = vadd.f32 %v977_v40, %v480_v21  ;;  %v1141_v23 = vpop.f32.mrb[14].mxu0  ;;  %1166 = vmatprep.mubr.bf16.mxu1 %v515_v18 }
 0x115   : > { %v492_v24 = vadd.f32 %v1141_v23, %v977_v40  ;;  %v483_v25 = vpop.f32.mrb[15].mxu0  ;;  %1167 = vmatmul.mubr.bf16.gmra.mrb[8].mxu1 %v516_v17  ;;  %v509_v27 = vmax.f32 %v489_v20, 0.0 }
 0x116   : > { %v484_v26 = vadd.f32 %v977_v40, %v483_v25  ;;  %v507_v29 = vmax.f32 %v481_v22, 0.0 }
 0x117   : > { %v510_v28 = vmax.f32 %v492_v24, 0.0 }
 0x118   : > { %v508_v30 = vmax.f32 %v484_v26, 0.0 }
 0x119   : > { %v518_v31 = vpack.c.bf16 %v510_v28, %v509_v27 }
 0x11a   : > { %v517_v32 = vpack.c.bf16 %v508_v30, %v507_v29 }
 0x11c   : > { %1170 = vmatprep.mubr.bf16.mxu1 %v517_v32 }
 0x11d   : > { %1171 = vmatmul.mubr.bf16.gmra.mrb[12].mxu1 %v518_v31 }
 0x1d8   : > { %v1160_v34 = vpop.f32.mrb[0].mxu1 }
 0x1d9   : > { %v624_v35 = vpop.f32.mrb[1].mxu1  ;;  %v633_v38 = vadd.f32 %v1160_v34, %v1373_v33 }
 0x1da   : > { %v625_v36 = vadd.f32 %v1373_v33, %v624_v35  ;;  %v1161_v37 = vpop.f32.mrb[2].mxu1 }
 0x1db   : > { %v636_v39 = vadd.f32 %v1161_v37, %v1373_v33  ;;  %v627_v40 = vpop.f32.mrb[3].mxu1  ;;  %v793_v47 = vmul.f32 %v633_v38, %v633_v38 }
 0x1dc   : > { %v628_v41 = vadd.f32 %v1373_v33, %v627_v40  ;;  %v791_v43 = vmul.f32 %v625_v36, %v625_v36 }
 0x1dd   : > { %v1039_v42 = vpack.c.bf16 %v636_v39, %v633_v38  ;;  %v794_v52 = vmul.f32 %v636_v39, %v636_v39 }
 0x1de   : > { %v1034_v44 = vpack.c.bf16 %v628_v41, %v625_v36  ;;  %v767_v45 = vadd.f32 %v628_v41, %v625_v36  ;;  %v792_v46 = vmul.f32 %v628_v41, %v628_v41 }
 0x1df   : > { %1071 = vst [vmem:[%s1382_s28 + $0x8] sm:$0xff] %v1039_v42  }
 0x1e0   : > { %1035 = vst [vmem:[%s1382_s28] sm:$0xff] %v1034_v44   ;;  %v768_v48 = vadd.f32 %v767_v45, %v633_v38  ;;  %v807_v49 = vadd.f32 %v792_v46, %v791_v43  ;;  %v1164_v50 = vpop.f32.mrb[4].mxu1 }
 0x1e1   : > { %v640_v51 = vpop.f32.mrb[5].mxu1  ;;  %v649_v57 = vadd.f32 %v1164_v50, %v1373_v33 }
 0x1e2   : > { %v808_v53 = vadd.f32 %v807_v49, %v793_v47  ;;  %v641_v54 = vadd.f32 %v1373_v33, %v640_v51  ;;  %v769_v55 = vadd.f32 %v768_v48, %v636_v39  ;;  %v1165_v56 = vpop.f32.mrb[6].mxu1 }
 0x1e3   : > { %v652_v58 = vadd.f32 %v1165_v56, %v1373_v33  ;;  %v643_v59 = vpop.f32.mrb[7].mxu1  ;;  %v797_v5 = vmul.f32 %v649_v57, %v649_v57 }
 0x1e4   : > { %v770_v60 = vadd.f32 %v769_v55, %v641_v54  ;;  %v795_v61 = vmul.f32 %v641_v54, %v641_v54  ;;  %v809_v62 = vadd.f32 %v808_v53, %v794_v52  ;;  %v644_v63 = vadd.f32 %v1373_v33, %v643_v59 }
 0x1e5   : > { %v1049_v0 = vpack.c.bf16 %v652_v58, %v649_v57  ;;  %v798_v10 = vmul.f32 %v652_v58, %v652_v58 }
 0x1e6   : > { %v810_v1 = vadd.f32 %v809_v62, %v795_v61  ;;  %v1044_v2 = vpack.c.bf16 %v644_v63, %v641_v54  ;;  %v771_v3 = vadd.f32 %v770_v60, %v644_v63  ;;  %v796_v4 = vmul.f32 %v644_v63, %v644_v63 }
 0x1e7   : > { %1073 = vst [vmem:[%s1382_s28 + $0x18] sm:$0xff] %v1049_v0  }
 0x1e8   : > { %1072 = vst [vmem:[%s1382_s28 + $0x10] sm:$0xff] %v1044_v2   ;;  %v772_v6 = vadd.f32 %v771_v3, %v649_v57  ;;  %v811_v7 = vadd.f32 %v810_v1, %v796_v4  ;;  %v1168_v8 = vpop.f32.mrb[8].mxu1 }
 0x1e9   : > { %v656_v9 = vpop.f32.mrb[9].mxu1  ;;  %v665_v15 = vadd.f32 %v1168_v8, %v1373_v33 }
 0x1ea   : > { %v812_v11 = vadd.f32 %v811_v7, %v797_v5  ;;  %v657_v12 = vadd.f32 %v1373_v33, %v656_v9  ;;  %v773_v13 = vadd.f32 %v772_v6, %v652_v58  ;;  %v1169_v14 = vpop.f32.mrb[10].mxu1  ;;  %v831_v6 = vlaneseq }
 0x1eb   : > { %v668_v16 = vadd.f32 %v1169_v14, %v1373_v33  ;;  %v659_v17 = vpop.f32.mrb[11].mxu1  ;;  %v801_v27 = vmul.f32 %v665_v15, %v665_v15 }
 0x1ec   : > { %v774_v18 = vadd.f32 %v773_v13, %v657_v12  ;;  %v799_v19 = vmul.f32 %v657_v12, %v657_v12  ;;  %v813_v20 = vadd.f32 %v812_v11, %v798_v10  ;;  %v660_v21 = vadd.f32 %v1373_v33, %v659_v17 }
 0x1ed   : > { %v1059_v22 = vpack.c.bf16 %v668_v16, %v665_v15  ;;  %v802_v32 = vmul.f32 %v668_v16, %v668_v16  ;;  %v832_v7 = vshrl.u32 %v831_v6, 7 }
 0x1ee   : > { %v814_v23 = vadd.f32 %v813_v20, %v799_v19  ;;  %v1054_v24 = vpack.c.bf16 %v660_v21, %v657_v12  ;;  %v775_v25 = vadd.f32 %v774_v18, %v660_v21  ;;  %v800_v26 = vmul.f32 %v660_v21, %v660_v21 }
 0x1ef   : > { %1075 = vst [vmem:[%s1382_s28 + $0x28] sm:$0xff] %v1059_v22   ;;  %vm833_vm0 = vcmp.eq.s32.totalorder %v832_v7, 0 }
 0x1f0   : > { %1074 = vst [vmem:[%s1382_s28 + $0x20] sm:$0xff] %v1054_v24   ;;  %v776_v28 = vadd.f32 %v775_v25, %v665_v15  ;;  %v815_v29 = vadd.f32 %v814_v23, %v800_v26  ;;  %v1172_v30 = vpop.f32.mrb[12].mxu1 }
 0x1f1   : > { %v672_v31 = vpop.f32.mrb[13].mxu1  ;;  %v681_v38 = vadd.f32 %v1172_v30, %v1373_v33 }
 0x1f2   : > { %v816_v34 = vadd.f32 %v815_v29, %v801_v27  ;;  %v673_v35 = vadd.f32 %v1373_v33, %v672_v31  ;;  %v777_v36 = vadd.f32 %v776_v28, %v668_v16  ;;  %v1173_v37 = vpop.f32.mrb[14].mxu1 }
 0x1f3   : > { %v684_v39 = vadd.f32 %v1173_v37, %v1373_v33  ;;  %v675_v40 = vpop.f32.mrb[15].mxu1  ;;  %v805_v50 = vmul.f32 %v681_v38, %v681_v38 }
 0x1f4   : > { %v778_v41 = vadd.f32 %v777_v36, %v673_v35  ;;  %v803_v42 = vmul.f32 %v673_v35, %v673_v35  ;;  %v817_v43 = vadd.f32 %v816_v34, %v802_v32  ;;  %v676_v44 = vadd.f32 %v1373_v33, %v675_v40 }
 0x1f5   : > { %v1069_v45 = vpack.c.bf16 %v684_v39, %v681_v38  ;;  %v806_v54 = vmul.f32 %v684_v39, %v684_v39 }
 0x1f6   : > { %v818_v46 = vadd.f32 %v817_v43, %v803_v42  ;;  %v1064_v47 = vpack.c.bf16 %v676_v44, %v673_v35  ;;  %v804_v48 = vmul.f32 %v676_v44, %v676_v44  ;;  %v779_v49 = vadd.f32 %v778_v41, %v676_v44 }
 0x1f7   : > { %1077 = vst [vmem:[%s1382_s28 + $0x38] sm:$0xff] %v1069_v45  }
 0x1f8   : > { %1076 = vst [vmem:[%s1382_s28 + $0x30] sm:$0xff] %v1064_v47   ;;  %v780_v51 = vadd.f32 %v779_v49, %v681_v38  ;;  %v819_v52 = vadd.f32 %v818_v46, %v804_v48 }
 0x1fa   : > { %v781_v53 = vadd.f32 %v780_v51, %v684_v39  ;;  %v820_v55 = vadd.f32 %v819_v52, %v805_v50 }
 0x1fc   : > { %782 = vadd.xlane.f32.xlu0 %v781_v53  ;;  %v821_v56 = vadd.f32 %v820_v55, %v806_v54 }
 0x200   : > { %822 = vadd.xlane.f32.xlu0 %v821_v56 }
 0x289   : > { %v783_v57 = vpop.xlane.xlu0 %782 }
 0x28a   : > { %v784_v58 = vrot.slane %v783_v57, 4 }
 0x28c   : > { %v785_v59 = vadd.f32 %v784_v58, %v783_v57 }
 0x28d   : > { %v823_v33 = vpop.xlane.xlu0 %822 }
 0x28e   : > { %v786_v60 = vrot.slane %v785_v59, 2  ;;  %v824_v61 = vrot.slane %v823_v33, 4 }
 0x290   : > { %v825_v62 = vadd.f32 %v824_v61, %v823_v33  ;;  %v787_v63 = vadd.f32 %v786_v60, %v785_v59 }
 0x292   : > { %v826_v0 = vrot.slane %v825_v62, 2  ;;  %v788_v1 = vrot.slane %v787_v63, 1 }
 0x294   : > { %v827_v2 = vadd.f32 %v826_v0, %v825_v62  ;;  %v789_v3 = vadd.f32 %v788_v1, %v787_v63 }
 0x296   : > { %1174 = vpush %v789_v3  ;;  %v828_v4 = vrot.slane %v827_v2, 1 }
 0x298   : > { %v829_v5 = vadd.f32 %v828_v4, %v827_v2 }
 0x29a   : > { %1176 = vpush %v829_v5 }
 0x2c7   : > { %s1175_s30 = spop %1174 }
 0x2c8   : > { %v834_v8 = vstv %s1175_s30 }
 0x2cb   : > { %s1177_s11 = spop %1176 }
 0x2cc   : > { %v835_v9 = vstv %s1177_s11 }
 0x2cd   : > { %v836_v10 = vsel %vm833_vm0, %v834_v8, %v835_v9 }
 0x2ce   : > { %841 = vst [vmem:[%s301_s9] sm:$0x3] %v836_v10 }
 0x2cf PF: > { %s17_s23 = sadd.s32 1, %s1240_s23   ;;  %s1425_s21 = smov %s1236_s22 }
 0x2d0   : > { %p14_p5 = scmp.ge.s32.totalorder %s17_s23, 4   ;;  %s1426_s22 = smov %s1428_s24 }
 0x2d2   :  { %16 = sbr.rel (!%p14_p5) target bundleno = 2 (0x2), region = 90 }

</bundles_post_ra>
